<compile_context>
chip_gen: v7x
topology: tpu7x:2x2x1
jax: 0.10.0
libtpu: 0.0.40
codegen_flags: <defaults>
</compile_context>

<pallas_src>
import math

import jax
import jax.numpy as jnp
from jax import lax
from jax.experimental import pallas as pl
from jax.experimental.pallas import tpu as pltpu

# ---- small, config-like constants (GPT-2 defaults, scaled down) ----
B = 2            # batch
S = 16           # sequence length
D = 64           # hidden_size
H = 4            # num_attention_heads
HD = D // H      # head_dim
INNER = 4 * D    # n_inner (default 4 * hidden)
EPS = 1e-5       # layer_norm_epsilon

_MM_DTYPE = jnp.bfloat16          # MXU operand dtype (f32 accumulation kept)
_MASK_NEG = -1e30                 # finite large-negative additive mask value

# Only split sequences across a grid (multi-TensorCore) once per-core compute
# would dominate the fixed ~0.35us per-grid-step overhead.
_SPLIT_TOKEN_THRESHOLD = 2048


def _layernorm(x, g, b):
    mu = jnp.mean(x, axis=-1, keepdims=True)
    var = jnp.mean((x - mu) ** 2, axis=-1, keepdims=True)
    return (x - mu) * lax.rsqrt(var + EPS) * g + b


def _gelu_new(x):
    # GPT-2 "gelu_new" (tanh approximation)
    return 0.5 * x * (1.0 + jnp.tanh(
        jnp.sqrt(2.0 / jnp.pi) * (x + 0.044715 * x * x * x)))


def gpt2_block_kernel(x_ref, mask_ref,
                      ln1_g, ln1_b,
                      w_qkv, b_qkv,
                      wo, bo,
                      ln2_g, ln2_b,
                      w_fc, b_fc, w_mo, b_mo,
                      o_ref):
    bb = x_ref.shape[0]                      # sequences handled by this step
    m = bb * S                               # total tokens in this block
    x = x_ref[...].reshape(m, D)             # (M, D) f32 (leading-dim collapse)

    # ---------- ln_1 ----------
    h = _layernorm(x, ln1_g[...], ln1_b[...])                   # (M, D) f32

    # ---------- attention ----------
    # Fused QKV: one lane-dense (M, D) x (D, 3D) matmul.  The 1/sqrt(HD)
    # scale is already folded into the Q columns of w_qkv / b_qkv.
    qkv = jnp.dot(h.astype(_MM_DTYPE), w_qkv[...],
                  preferred_element_type=jnp.float32) + b_qkv[...]   # (M, 3D)

    # Head split: static lane slices + stack -> (H, M, HD).  Cheap relayout;
    # avoids any in-kernel minor-dim reshape/transpose.
    def _heads(base):
        return jnp.stack([qkv[:, base + i * HD: base + (i + 1) * HD]
                          for i in range(H)])
    q = _heads(0)            # (H, M, HD) f32, already scaled
    k = _heads(D)
    v = _heads(2 * D)

    # Head-batched scores (inherently K=HD matmuls; head is the batch dim).
    scores = jnp.einsum('hqd,hkd->hqk',
                        q.astype(_MM_DTYPE), k.astype(_MM_DTYPE),
                        preferred_element_type=jnp.float32)          # (H, M, M)
    # Additive mask (causal within a sequence, -1e30 across sequences),
    # built once wrapper-side and resident in VMEM.
    scores = scores + mask_ref[...][None, :, :]

    scores = scores - jnp.max(scores, axis=-1, keepdims=True)
    p = jnp.exp(scores)
    p = p * pl.reciprocal(jnp.sum(p, axis=-1, keepdims=True), approx=True)

    ctx = jnp.einsum('hqk,hkd->hqd',
                     p.astype(_MM_DTYPE), v.astype(_MM_DTYPE),
                     preferred_element_type=jnp.float32)             # (H, M, HD)

    # Fused output projection: merge heads along lanes, then one full-width
    # (M, D) x (D, D) matmul against the original c_proj weight.
    ctx_md = jnp.concatenate([ctx[i] for i in range(H)], axis=-1)    # (M, D)
    attn = jnp.dot(ctx_md.astype(_MM_DTYPE), wo[...],
                   preferred_element_type=jnp.float32) + bo[...]     # (M, D)
    h1 = x + attn                                                    # residual 1

    # ---------- ln_2 + MLP ----------
    h2 = _layernorm(h1, ln2_g[...], ln2_b[...])
    fc = jnp.dot(h2.astype(_MM_DTYPE), w_fc[...],
                 preferred_element_type=jnp.float32) + b_fc[...]     # (M, 4D)
    fc = _gelu_new(fc)
    mlp = jnp.dot(fc.astype(_MM_DTYPE), w_mo[...],
                  preferred_element_type=jnp.float32) + b_mo[...]    # (M, D)

    o_ref[...] = (h1 + mlp).reshape(bb, S, D)                        # residual 2


def _build_mask(bb):
    """Additive mask for a block of bb sequences processed together:
    causal within a sequence, -1e30 across sequences."""
    m = bb * S
    r = jnp.arange(m, dtype=jnp.int32)[:, None]
    c = jnp.arange(m, dtype=jnp.int32)[None, :]
    allowed = jnp.logical_and(r // S == c // S, c <= r)
    return jnp.where(allowed, 0.0, _MASK_NEG).astype(jnp.float32)


def gpt2_block(x, params):
    # ---- wrapper-side weight prep (plain XLA, free of Mosaic concerns) ----
    scale = 1.0 / math.sqrt(HD)
    qcol_scale = jnp.concatenate(
        [jnp.full((1, D), scale, jnp.float32),
         jnp.ones((1, 2 * D), jnp.float32)], axis=1)                 # (1, 3D)

    w_qkv = (params["w_qkv"] * qcol_scale).astype(_MM_DTYPE)         # (D, 3D)
    b_qkv = (params["b_qkv"].reshape(1, 3 * D) * qcol_scale).astype(jnp.float32)

    kernel_params = [
        params["ln1_g"], params["ln1_b"],
        w_qkv, b_qkv,
        params["w_ao"].astype(_MM_DTYPE), params["b_ao"],
        params["ln2_g"], params["ln2_b"],
        params["w_fc"].astype(_MM_DTYPE), params["b_fc"],
        params["w_mo"].astype(_MM_DTYPE), params["b_mo"],
    ]

    # Collapsed grid on all generations at these shapes; only split per
    # sequence when the per-core token count is large enough to amortize the
    # fixed per-step cost (token-count gate, not device-kind gate).
    bb = 1 if (B > 1 and B * S >= _SPLIT_TOKEN_THRESHOLD) else B
    grid = (B // bb,)

    mask = _build_mask(bb)                                           # (bb*S, bb*S)

    def full_spec(p):
        n = p.ndim
        return pl.BlockSpec(p.shape, lambda b, _n=n: (0,) * _n)

    in_specs = [pl.BlockSpec((bb, S, D), lambda b: (b, 0, 0)),
                full_spec(mask)]
    in_specs += [full_spec(p) for p in kernel_params]

    return pl.pallas_call(
        gpt2_block_kernel,
        out_shape=jax.ShapeDtypeStruct((B, S, D), jnp.float32),
        grid=grid,
        in_specs=in_specs,
        out_specs=pl.BlockSpec((bb, S, D), lambda b: (b, 0, 0)),
        compiler_params=pltpu.CompilerParams(
            dimension_semantics=("parallel",)),
    )(x, mask, *kernel_params)


def init_params(key):
    ks = jax.random.split(key, 4)
    std = 0.02
    return {
        # LayerNorm parameters (kept 2-D as (1, D) for TPU layout friendliness)
        "ln1_g": jnp.ones((1, D), jnp.float32),
        "ln1_b": jnp.zeros((1, D), jnp.float32),
        "ln2_g": jnp.ones((1, D), jnp.float32),
        "ln2_b": jnp.zeros((1, D), jnp.float32),
        # Conv1D weights: [in, out]
        "w_qkv": std * jax.random.normal(ks[0], (D, 3 * D), jnp.float32),
        "b_qkv": jnp.zeros((1, 3 * D), jnp.float32),
        "w_ao": std * jax.random.normal(ks[1], (D, D), jnp.float32),
        "b_ao": jnp.zeros((1, D), jnp.float32),
        "w_fc": std * jax.random.normal(ks[2], (D, INNER), jnp.float32),
        "b_fc": jnp.zeros((1, INNER), jnp.float32),
        "w_mo": std * jax.random.normal(ks[3], (INNER, D), jnp.float32),
        "b_mo": jnp.zeros((1, D), jnp.float32),
    }


def gpt2_block_reference(x, p):
    """Plain-JAX reference mirroring the PyTorch GPT2Block forward (f32)."""
    hp = lax.Precision.HIGHEST

    def ln(v, g, b):
        mu = jnp.mean(v, axis=-1, keepdims=True)
        var = jnp.mean((v - mu) ** 2, axis=-1, keepdims=True)
        return (v - mu) * lax.rsqrt(var + EPS) * g + b

    h = ln(x, p["ln1_g"], p["ln1_b"])
    qkv = jnp.einsum("bsd,de->bse", h, p["w_qkv"], precision=hp) + p["b_qkv"]
    q, k, v = jnp.split(qkv, 3, axis=-1)
    q = q.reshape(B, S, H, HD).transpose(0, 2, 1, 3)
    k = k.reshape(B, S, H, HD).transpose(0, 2, 1, 3)
    v = v.reshape(B, S, H, HD).transpose(0, 2, 1, 3)
    scores = jnp.einsum("bhqd,bhkd->bhqk", q, k, precision=hp) / (HD ** 0.5)
    causal = jnp.tril(jnp.ones((S, S), bool))
    scores = jnp.where(causal, scores, jnp.finfo(jnp.float32).min)
    w = jax.nn.softmax(scores, axis=-1)
    attn = jnp.einsum("bhqk,bhkd->bhqd", w, v, precision=hp)
    attn = attn.transpose(0, 2, 1, 3).reshape(B, S, D)
    attn = jnp.einsum("bsd,de->bse", attn, p["w_ao"], precision=hp) + p["b_ao"]
    h1 = x + attn
    h2 = ln(h1, p["ln2_g"], p["ln2_b"])
    fc = jnp.einsum("bsd,df->bsf", h2, p["w_fc"], precision=hp) + p["b_fc"]
    fc = 0.5 * fc * (1.0 + jnp.tanh(jnp.sqrt(2.0 / jnp.pi) * (fc + 0.044715 * fc ** 3)))
    mlp = jnp.einsum("bsf,fd->bsd", fc, p["w_mo"], precision=hp) + p["b_mo"]
    return h1 + mlp


if __name__ == "__main__":
    key = jax.random.PRNGKey(0)
    kx, kp = jax.random.split(key)
    x = jax.random.normal(kx, (B, S, D), jnp.float32)
    params = init_params(kp)

    out = jax.block_until_ready(gpt2_block(x, params))
    ref = jax.block_until_ready(gpt2_block_reference(x, params))

    assert out.shape == (B, S, D)
    # bf16 MXU operands with f32 accumulation vs. an f32 HIGHEST-precision
    # reference: measured/expected error is well below this tolerance.
    max_err = float(jnp.max(jnp.abs(out - ref)))
    assert jnp.allclose(out, ref, atol=3e-3, rtol=3e-3), max_err

    print("KERNEL_OK")
</pallas_src>

<mosaic_0001>
module attributes {stable_mosaic.version = 11 : i64} {
  func.func @gpt2_block_kernel(%arg0: i32, %arg1: memref<2x16x64xf32, #tpu.memory_space<vmem>>, %arg2: memref<32x32xf32, #tpu.memory_space<vmem>>, %arg3: memref<1x64xf32, #tpu.memory_space<vmem>>, %arg4: memref<1x64xf32, #tpu.memory_space<vmem>>, %arg5: memref<64x192xbf16, #tpu.memory_space<vmem>>, %arg6: memref<1x192xf32, #tpu.memory_space<vmem>>, %arg7: memref<64x64xbf16, #tpu.memory_space<vmem>>, %arg8: memref<1x64xf32, #tpu.memory_space<vmem>>, %arg9: memref<1x64xf32, #tpu.memory_space<vmem>>, %arg10: memref<1x64xf32, #tpu.memory_space<vmem>>, %arg11: memref<64x256xbf16, #tpu.memory_space<vmem>>, %arg12: memref<1x256xf32, #tpu.memory_space<vmem>>, %arg13: memref<256x64xbf16, #tpu.memory_space<vmem>>, %arg14: memref<1x64xf32, #tpu.memory_space<vmem>>, %arg15: memref<2x16x64xf32, #tpu.memory_space<vmem>>) attributes {dimension_semantics = [#tpu.dimension_semantics<parallel>], iteration_bounds = array<i64: 1>, scalar_prefetch = 0 : i64, scratch_operands = 0 : i64, tpu.core_type = #tpu.core_type<tc>, window_params = [{transform_indices = @transform_0, window_bounds = array<i64: 2, 16, 64>}, {pipeline_mode = #tpu.pipeline_mode<synchronous>, transform_indices = @transform_1, window_bounds = array<i64: 32, 32>}, {pipeline_mode = #tpu.pipeline_mode<synchronous>, transform_indices = @transform_2, window_bounds = array<i64: 1, 64>}, {pipeline_mode = #tpu.pipeline_mode<synchronous>, transform_indices = @transform_3, window_bounds = array<i64: 1, 64>}, {pipeline_mode = #tpu.pipeline_mode<synchronous>, transform_indices = @transform_4, window_bounds = array<i64: 64, 192>}, {pipeline_mode = #tpu.pipeline_mode<synchronous>, transform_indices = @transform_5, window_bounds = array<i64: 1, 192>}, {pipeline_mode = #tpu.pipeline_mode<synchronous>, transform_indices = @transform_6, window_bounds = array<i64: 64, 64>}, {pipeline_mode = #tpu.pipeline_mode<synchronous>, transform_indices = @transform_7, window_bounds = array<i64: 1, 64>}, {pipeline_mode = #tpu.pipeline_mode<synchronous>, transform_indices = @transform_8, window_bounds = array<i64: 1, 64>}, {pipeline_mode = #tpu.pipeline_mode<synchronous>, transform_indices = @transform_9, window_bounds = array<i64: 1, 64>}, {pipeline_mode = #tpu.pipeline_mode<synchronous>, transform_indices = @transform_10, window_bounds = array<i64: 64, 256>}, {pipeline_mode = #tpu.pipeline_mode<synchronous>, transform_indices = @transform_11, window_bounds = array<i64: 1, 256>}, {pipeline_mode = #tpu.pipeline_mode<synchronous>, transform_indices = @transform_12, window_bounds = array<i64: 256, 64>}, {pipeline_mode = #tpu.pipeline_mode<synchronous>, transform_indices = @transform_13, window_bounds = array<i64: 1, 64>}, {transform_indices = @transform_14, window_bounds = array<i64: 2, 16, 64>}]} {
    %c0 = arith.constant 0 : index
    %c0_0 = arith.constant 0 : index
    %c0_1 = arith.constant 0 : index
    %0 = vector.load %arg1[%c0, %c0_0, %c0_1] : memref<2x16x64xf32, #tpu.memory_space<vmem>>, vector<2x16x64xf32>
    %1 = vector.shape_cast %0 : vector<2x16x64xf32> to vector<32x64xf32>
    %c0_2 = arith.constant 0 : index
    %c0_3 = arith.constant 0 : index
    %2 = vector.load %arg3[%c0_2, %c0_3] : memref<1x64xf32, #tpu.memory_space<vmem>>, vector<1x64xf32>
    %c0_4 = arith.constant 0 : index
    %c0_5 = arith.constant 0 : index
    %3 = vector.load %arg4[%c0_4, %c0_5] : memref<1x64xf32, #tpu.memory_space<vmem>>, vector<1x64xf32>
    %cst = arith.constant dense<0.000000e+00> : vector<32xf32>
    %4 = vector.multi_reduction <add>, %1, %cst [1] : vector<32x64xf32> to vector<32xf32>
    %5 = vector.shape_cast %4 : vector<32xf32> to vector<32x1xf32>
    %cst_6 = arith.constant 6.400000e+01 : f32
    %6 = vector.broadcast %cst_6 : f32 to vector<32x1xf32>
    %7 = arith.divf %5, %6 : vector<32x1xf32>
    %8 = vector.broadcast %7 : vector<32x1xf32> to vector<32x64xf32>
    %9 = arith.subf %1, %8 : vector<32x64xf32>
    %10 = arith.mulf %9, %9 : vector<32x64xf32>
    %cst_7 = arith.constant dense<0.000000e+00> : vector<32xf32>
    %11 = vector.multi_reduction <add>, %10, %cst_7 [1] : vector<32x64xf32> to vector<32xf32>
    %12 = vector.shape_cast %11 : vector<32xf32> to vector<32x1xf32>
    %cst_8 = arith.constant 6.400000e+01 : f32
    %13 = vector.broadcast %cst_8 : f32 to vector<32x1xf32>
    %14 = arith.divf %12, %13 : vector<32x1xf32>
    %15 = vector.broadcast %7 : vector<32x1xf32> to vector<32x64xf32>
    %16 = arith.subf %1, %15 : vector<32x64xf32>
    %cst_9 = arith.constant 9.99999974E-6 : f32
    %17 = vector.broadcast %cst_9 : f32 to vector<32x1xf32>
    %18 = arith.addf %14, %17 : vector<32x1xf32>
    %19 = math.rsqrt %18 : vector<32x1xf32>
    %20 = vector.broadcast %19 : vector<32x1xf32> to vector<32x64xf32>
    %21 = arith.mulf %16, %20 : vector<32x64xf32>
    %22 = vector.broadcast %2 : vector<1x64xf32> to vector<32x64xf32>
    %23 = arith.mulf %21, %22 : vector<32x64xf32>
    %24 = vector.broadcast %3 : vector<1x64xf32> to vector<32x64xf32>
    %25 = arith.addf %23, %24 : vector<32x64xf32>
    %26 = arith.truncf %25 : vector<32x64xf32> to vector<32x64xbf16>
    %c0_10 = arith.constant 0 : index
    %c0_11 = arith.constant 0 : index
    %27 = vector.load %arg5[%c0_10, %c0_11] : memref<64x192xbf16, #tpu.memory_space<vmem>>, vector<64x192xbf16>
    %cst_12 = arith.constant dense<0.000000e+00> : vector<32x192xf32>
    %28 = tpu.matmul %26, %27, %cst_12 {dimension_numbers = #tpu.dot_dimension_numbers<[1], [0], [0], [1], [0, 0, 1, 1], [], []>} : vector<32x64xbf16>, vector<64x192xbf16>, vector<32x192xf32> -> vector<32x192xf32>
    %c0_13 = arith.constant 0 : index
    %c0_14 = arith.constant 0 : index
    %29 = vector.load %arg6[%c0_13, %c0_14] : memref<1x192xf32, #tpu.memory_space<vmem>>, vector<1x192xf32>
    %30 = vector.broadcast %29 : vector<1x192xf32> to vector<32x192xf32>
    %31 = arith.addf %28, %30 : vector<32x192xf32>
    %32 = vector.extract_strided_slice %31 {offsets = [0, 0], sizes = [32, 16], strides = [1, 1]} : vector<32x192xf32> to vector<32x16xf32>
    %33 = vector.extract_strided_slice %31 {offsets = [0, 16], sizes = [32, 16], strides = [1, 1]} : vector<32x192xf32> to vector<32x16xf32>
    %34 = vector.extract_strided_slice %31 {offsets = [0, 32], sizes = [32, 16], strides = [1, 1]} : vector<32x192xf32> to vector<32x16xf32>
    %35 = vector.extract_strided_slice %31 {offsets = [0, 48], sizes = [32, 16], strides = [1, 1]} : vector<32x192xf32> to vector<32x16xf32>
    %36 = vector.shape_cast %32 : vector<32x16xf32> to vector<1x32x16xf32>
    %37 = vector.shape_cast %33 : vector<32x16xf32> to vector<1x32x16xf32>
    %38 = vector.shape_cast %34 : vector<32x16xf32> to vector<1x32x16xf32>
    %39 = vector.shape_cast %35 : vector<32x16xf32> to vector<1x32x16xf32>
    %40 = tpu.concatenate %36, %37, %38, %39 in 0 : vector<1x32x16xf32>, vector<1x32x16xf32>, vector<1x32x16xf32>, vector<1x32x16xf32> -> vector<4x32x16xf32>
    %41 = vector.extract_strided_slice %31 {offsets = [0, 64], sizes = [32, 16], strides = [1, 1]} : vector<32x192xf32> to vector<32x16xf32>
    %42 = vector.extract_strided_slice %31 {offsets = [0, 80], sizes = [32, 16], strides = [1, 1]} : vector<32x192xf32> to vector<32x16xf32>
    %43 = vector.extract_strided_slice %31 {offsets = [0, 96], sizes = [32, 16], strides = [1, 1]} : vector<32x192xf32> to vector<32x16xf32>
    %44 = vector.extract_strided_slice %31 {offsets = [0, 112], sizes = [32, 16], strides = [1, 1]} : vector<32x192xf32> to vector<32x16xf32>
    %45 = vector.shape_cast %41 : vector<32x16xf32> to vector<1x32x16xf32>
    %46 = vector.shape_cast %42 : vector<32x16xf32> to vector<1x32x16xf32>
    %47 = vector.shape_cast %43 : vector<32x16xf32> to vector<1x32x16xf32>
    %48 = vector.shape_cast %44 : vector<32x16xf32> to vector<1x32x16xf32>
    %49 = tpu.concatenate %45, %46, %47, %48 in 0 : vector<1x32x16xf32>, vector<1x32x16xf32>, vector<1x32x16xf32>, vector<1x32x16xf32> -> vector<4x32x16xf32>
    %50 = vector.extract_strided_slice %31 {offsets = [0, 128], sizes = [32, 16], strides = [1, 1]} : vector<32x192xf32> to vector<32x16xf32>
    %51 = vector.extract_strided_slice %31 {offsets = [0, 144], sizes = [32, 16], strides = [1, 1]} : vector<32x192xf32> to vector<32x16xf32>
    %52 = vector.extract_strided_slice %31 {offsets = [0, 160], sizes = [32, 16], strides = [1, 1]} : vector<32x192xf32> to vector<32x16xf32>
    %53 = vector.extract_strided_slice %31 {offsets = [0, 176], sizes = [32, 16], strides = [1, 1]} : vector<32x192xf32> to vector<32x16xf32>
    %54 = vector.shape_cast %50 : vector<32x16xf32> to vector<1x32x16xf32>
    %55 = vector.shape_cast %51 : vector<32x16xf32> to vector<1x32x16xf32>
    %56 = vector.shape_cast %52 : vector<32x16xf32> to vector<1x32x16xf32>
    %57 = vector.shape_cast %53 : vector<32x16xf32> to vector<1x32x16xf32>
    %58 = tpu.concatenate %54, %55, %56, %57 in 0 : vector<1x32x16xf32>, vector<1x32x16xf32>, vector<1x32x16xf32>, vector<1x32x16xf32> -> vector<4x32x16xf32>
    %59 = arith.truncf %40 : vector<4x32x16xf32> to vector<4x32x16xbf16>
    %60 = arith.truncf %49 : vector<4x32x16xf32> to vector<4x32x16xbf16>
    "tpu.trace_start"() <{level = 10 : i32, message = "hqd,hkd->hqk"}> : () -> ()
    %cst_15 = arith.constant dense<0.000000e+00> : vector<4x32x32xf32>
    %61 = tpu.matmul %59, %60, %cst_15 {dimension_numbers = #tpu.dot_dimension_numbers<[2], [2], [1], [1], [0, 0, 0, 1, 1, 1], [0], [0]>} : vector<4x32x16xbf16>, vector<4x32x16xbf16>, vector<4x32x32xf32> -> vector<4x32x32xf32>
    "tpu.trace_stop"() : () -> ()
    %c0_16 = arith.constant 0 : index
    %c0_17 = arith.constant 0 : index
    %62 = vector.load %arg2[%c0_16, %c0_17] : memref<32x32xf32, #tpu.memory_space<vmem>>, vector<32x32xf32>
    %63 = vector.shape_cast %62 : vector<32x32xf32> to vector<1x32x32xf32>
    %64 = vector.broadcast %63 : vector<1x32x32xf32> to vector<4x32x32xf32>
    %65 = arith.addf %61, %64 : vector<4x32x32xf32>
    %cst_18 = arith.constant dense<0xFF800000> : vector<4x32xf32>
    %66 = vector.multi_reduction <maximumf>, %65, %cst_18 [2] : vector<4x32x32xf32> to vector<4x32xf32>
    %67 = vector.shape_cast %66 : vector<4x32xf32> to vector<4x32x1xf32>
    %68 = vector.broadcast %67 : vector<4x32x1xf32> to vector<4x32x32xf32>
    %69 = arith.subf %65, %68 : vector<4x32x32xf32>
    %70 = math.exp %69 : vector<4x32x32xf32>
    %cst_19 = arith.constant dense<0.000000e+00> : vector<4x32xf32>
    %71 = vector.multi_reduction <add>, %70, %cst_19 [2] : vector<4x32x32xf32> to vector<4x32xf32>
    %72 = vector.shape_cast %71 : vector<4x32xf32> to vector<4x32x1xf32>
    %73 = tpu.reciprocal %72 {approx = true} : vector<4x32x1xf32> -> vector<4x32x1xf32>
    %74 = vector.broadcast %73 : vector<4x32x1xf32> to vector<4x32x32xf32>
    %75 = arith.mulf %70, %74 : vector<4x32x32xf32>
    %76 = arith.truncf %75 : vector<4x32x32xf32> to vector<4x32x32xbf16>
    %77 = arith.truncf %58 : vector<4x32x16xf32> to vector<4x32x16xbf16>
    "tpu.trace_start"() <{level = 10 : i32, message = "hqk,hkd->hqd"}> : () -> ()
    %cst_20 = arith.constant dense<0.000000e+00> : vector<4x32x16xf32>
    %78 = tpu.matmul %76, %77, %cst_20 {dimension_numbers = #tpu.dot_dimension_numbers<[2], [1], [1], [2], [0, 0, 0, 1, 1, 2], [0], [0]>} : vector<4x32x32xbf16>, vector<4x32x16xbf16>, vector<4x32x16xf32> -> vector<4x32x16xf32>
    "tpu.trace_stop"() : () -> ()
    %79 = vector.extract_strided_slice %78 {offsets = [0, 0, 0], sizes = [1, 32, 16], strides = [1, 1, 1]} : vector<4x32x16xf32> to vector<1x32x16xf32>
    %80 = vector.shape_cast %79 : vector<1x32x16xf32> to vector<32x16xf32>
    %81 = vector.extract_strided_slice %78 {offsets = [1, 0, 0], sizes = [1, 32, 16], strides = [1, 1, 1]} : vector<4x32x16xf32> to vector<1x32x16xf32>
    %82 = vector.shape_cast %81 : vector<1x32x16xf32> to vector<32x16xf32>
    %83 = vector.extract_strided_slice %78 {offsets = [2, 0, 0], sizes = [1, 32, 16], strides = [1, 1, 1]} : vector<4x32x16xf32> to vector<1x32x16xf32>
    %84 = vector.shape_cast %83 : vector<1x32x16xf32> to vector<32x16xf32>
    %85 = vector.extract_strided_slice %78 {offsets = [3, 0, 0], sizes = [1, 32, 16], strides = [1, 1, 1]} : vector<4x32x16xf32> to vector<1x32x16xf32>
    %86 = vector.shape_cast %85 : vector<1x32x16xf32> to vector<32x16xf32>
    %87 = tpu.concatenate %80, %82, %84, %86 in 1 : vector<32x16xf32>, vector<32x16xf32>, vector<32x16xf32>, vector<32x16xf32> -> vector<32x64xf32>
    %88 = arith.truncf %87 : vector<32x64xf32> to vector<32x64xbf16>
    %c0_21 = arith.constant 0 : index
    %c0_22 = arith.constant 0 : index
    %89 = vector.load %arg7[%c0_21, %c0_22] : memref<64x64xbf16, #tpu.memory_space<vmem>>, vector<64x64xbf16>
    %cst_23 = arith.constant dense<0.000000e+00> : vector<32x64xf32>
    %90 = tpu.matmul %88, %89, %cst_23 {dimension_numbers = #tpu.dot_dimension_numbers<[1], [0], [0], [1], [0, 0, 1, 1], [], []>} : vector<32x64xbf16>, vector<64x64xbf16>, vector<32x64xf32> -> vector<32x64xf32>
    %c0_24 = arith.constant 0 : index
    %c0_25 = arith.constant 0 : index
    %91 = vector.load %arg8[%c0_24, %c0_25] : memref<1x64xf32, #tpu.memory_space<vmem>>, vector<1x64xf32>
    %92 = vector.broadcast %91 : vector<1x64xf32> to vector<32x64xf32>
    %93 = arith.addf %90, %92 : vector<32x64xf32>
    %94 = arith.addf %1, %93 : vector<32x64xf32>
    %c0_26 = arith.constant 0 : index
    %c0_27 = arith.constant 0 : index
    %95 = vector.load %arg9[%c0_26, %c0_27] : memref<1x64xf32, #tpu.memory_space<vmem>>, vector<1x64xf32>
    %c0_28 = arith.constant 0 : index
    %c0_29 = arith.constant 0 : index
    %96 = vector.load %arg10[%c0_28, %c0_29] : memref<1x64xf32, #tpu.memory_space<vmem>>, vector<1x64xf32>
    %cst_30 = arith.constant dense<0.000000e+00> : vector<32xf32>
    %97 = vector.multi_reduction <add>, %94, %cst_30 [1] : vector<32x64xf32> to vector<32xf32>
    %98 = vector.shape_cast %97 : vector<32xf32> to vector<32x1xf32>
    %cst_31 = arith.constant 6.400000e+01 : f32
    %99 = vector.broadcast %cst_31 : f32 to vector<32x1xf32>
    %100 = arith.divf %98, %99 : vector<32x1xf32>
    %101 = vector.broadcast %100 : vector<32x1xf32> to vector<32x64xf32>
    %102 = arith.subf %94, %101 : vector<32x64xf32>
    %103 = arith.mulf %102, %102 : vector<32x64xf32>
    %cst_32 = arith.constant dense<0.000000e+00> : vector<32xf32>
    %104 = vector.multi_reduction <add>, %103, %cst_32 [1] : vector<32x64xf32> to vector<32xf32>
    %105 = vector.shape_cast %104 : vector<32xf32> to vector<32x1xf32>
    %cst_33 = arith.constant 6.400000e+01 : f32
    %106 = vector.broadcast %cst_33 : f32 to vector<32x1xf32>
    %107 = arith.divf %105, %106 : vector<32x1xf32>
    %108 = vector.broadcast %100 : vector<32x1xf32> to vector<32x64xf32>
    %109 = arith.subf %94, %108 : vector<32x64xf32>
    %cst_34 = arith.constant 9.99999974E-6 : f32
    %110 = vector.broadcast %cst_34 : f32 to vector<32x1xf32>
    %111 = arith.addf %107, %110 : vector<32x1xf32>
    %112 = math.rsqrt %111 : vector<32x1xf32>
    %113 = vector.broadcast %112 : vector<32x1xf32> to vector<32x64xf32>
    %114 = arith.mulf %109, %113 : vector<32x64xf32>
    %115 = vector.broadcast %95 : vector<1x64xf32> to vector<32x64xf32>
    %116 = arith.mulf %114, %115 : vector<32x64xf32>
    %117 = vector.broadcast %96 : vector<1x64xf32> to vector<32x64xf32>
    %118 = arith.addf %116, %117 : vector<32x64xf32>
    %119 = arith.truncf %118 : vector<32x64xf32> to vector<32x64xbf16>
    %c0_35 = arith.constant 0 : index
    %c0_36 = arith.constant 0 : index
    %120 = vector.load %arg11[%c0_35, %c0_36] : memref<64x256xbf16, #tpu.memory_space<vmem>>, vector<64x256xbf16>
    %cst_37 = arith.constant dense<0.000000e+00> : vector<32x256xf32>
    %121 = tpu.matmul %119, %120, %cst_37 {dimension_numbers = #tpu.dot_dimension_numbers<[1], [0], [0], [1], [0, 0, 1, 1], [], []>} : vector<32x64xbf16>, vector<64x256xbf16>, vector<32x256xf32> -> vector<32x256xf32>
    %c0_38 = arith.constant 0 : index
    %c0_39 = arith.constant 0 : index
    %122 = vector.load %arg12[%c0_38, %c0_39] : memref<1x256xf32, #tpu.memory_space<vmem>>, vector<1x256xf32>
    %123 = vector.broadcast %122 : vector<1x256xf32> to vector<32x256xf32>
    %124 = arith.addf %121, %123 : vector<32x256xf32>
    %cst_40 = arith.constant 5.000000e-01 : f32
    %125 = vector.broadcast %cst_40 : f32 to vector<32x256xf32>
    %126 = arith.mulf %125, %124 : vector<32x256xf32>
    %cst_41 = arith.constant 0.636619746 : f32
    %127 = math.sqrt %cst_41 : f32
    %cst_42 = arith.constant 4.471500e-02 : f32
    %128 = vector.broadcast %cst_42 : f32 to vector<32x256xf32>
    %129 = arith.mulf %128, %124 : vector<32x256xf32>
    %130 = arith.mulf %129, %124 : vector<32x256xf32>
    %131 = arith.mulf %130, %124 : vector<32x256xf32>
    %132 = arith.addf %124, %131 : vector<32x256xf32>
    %133 = vector.broadcast %127 : f32 to vector<32x256xf32>
    %134 = arith.mulf %133, %132 : vector<32x256xf32>
    %135 = math.tanh %134 : vector<32x256xf32>
    %cst_43 = arith.constant 1.000000e+00 : f32
    %136 = vector.broadcast %cst_43 : f32 to vector<32x256xf32>
    %137 = arith.addf %136, %135 : vector<32x256xf32>
    %138 = arith.mulf %126, %137 : vector<32x256xf32>
    %139 = arith.truncf %138 : vector<32x256xf32> to vector<32x256xbf16>
    %c0_44 = arith.constant 0 : index
    %c0_45 = arith.constant 0 : index
    %140 = vector.load %arg13[%c0_44, %c0_45] : memref<256x64xbf16, #tpu.memory_space<vmem>>, vector<256x64xbf16>
    %cst_46 = arith.constant dense<0.000000e+00> : vector<32x64xf32>
    %141 = tpu.matmul %139, %140, %cst_46 {dimension_numbers = #tpu.dot_dimension_numbers<[1], [0], [0], [1], [0, 0, 1, 1], [], []>} : vector<32x256xbf16>, vector<256x64xbf16>, vector<32x64xf32> -> vector<32x64xf32>
    %c0_47 = arith.constant 0 : index
    %c0_48 = arith.constant 0 : index
    %142 = vector.load %arg14[%c0_47, %c0_48] : memref<1x64xf32, #tpu.memory_space<vmem>>, vector<1x64xf32>
    %143 = vector.broadcast %142 : vector<1x64xf32> to vector<32x64xf32>
    %144 = arith.addf %141, %143 : vector<32x64xf32>
    %145 = arith.addf %94, %144 : vector<32x64xf32>
    %146 = vector.shape_cast %145 : vector<32x64xf32> to vector<2x16x64xf32>
    %c0_49 = arith.constant 0 : index
    %c0_50 = arith.constant 0 : index
    %c0_51 = arith.constant 0 : index
    %147 = vector.load %arg15[%c0_49, %c0_50, %c0_51] : memref<2x16x64xf32, #tpu.memory_space<vmem>>, vector<2x16x64xf32>
    tpu.vector_store %arg15[%c0_49, %c0_50, %c0_51], %146 {strides = array<i32>} : memref<2x16x64xf32, #tpu.memory_space<vmem>>, vector<2x16x64xf32>,
    return
  }
  func.func @transform_0(%arg0: i32) -> (i32, i32, i32) {
    %c0_i32 = arith.constant 0 : i32
    %c0_i32_0 = arith.constant 0 : i32
    %c0_i32_1 = arith.constant 0 : i32
    return %arg0, %c0_i32, %c0_i32_0 : i32, i32, i32
  }
  func.func @transform_1(%arg0: i32) -> (i32, i32) {
    %c0_i32 = arith.constant 0 : i32
    %c0_i32_0 = arith.constant 0 : i32
    %c0_i32_1 = arith.constant 0 : i32
    return %c0_i32, %c0_i32_0 : i32, i32
  }
  func.func @transform_2(%arg0: i32) -> (i32, i32) {
    %c0_i32 = arith.constant 0 : i32
    %c0_i32_0 = arith.constant 0 : i32
    %c0_i32_1 = arith.constant 0 : i32
    return %c0_i32, %c0_i32_0 : i32, i32
  }
  func.func @transform_3(%arg0: i32) -> (i32, i32) {
    %c0_i32 = arith.constant 0 : i32
    %c0_i32_0 = arith.constant 0 : i32
    %c0_i32_1 = arith.constant 0 : i32
    return %c0_i32, %c0_i32_0 : i32, i32
  }
  func.func @transform_4(%arg0: i32) -> (i32, i32) {
    %c0_i32 = arith.constant 0 : i32
    %c0_i32_0 = arith.constant 0 : i32
    %c0_i32_1 = arith.constant 0 : i32
    return %c0_i32, %c0_i32_0 : i32, i32
  }
  func.func @transform_5(%arg0: i32) -> (i32, i32) {
    %c0_i32 = arith.constant 0 : i32
    %c0_i32_0 = arith.constant 0 : i32
    %c0_i32_1 = arith.constant 0 : i32
    return %c0_i32, %c0_i32_0 : i32, i32
  }
  func.func @transform_6(%arg0: i32) -> (i32, i32) {
    %c0_i32 = arith.constant 0 : i32
    %c0_i32_0 = arith.constant 0 : i32
    %c0_i32_1 = arith.constant 0 : i32
    return %c0_i32, %c0_i32_0 : i32, i32
  }
  func.func @transform_7(%arg0: i32) -> (i32, i32) {
    %c0_i32 = arith.constant 0 : i32
    %c0_i32_0 = arith.constant 0 : i32
    %c0_i32_1 = arith.constant 0 : i32
    return %c0_i32, %c0_i32_0 : i32, i32
  }
  func.func @transform_8(%arg0: i32) -> (i32, i32) {
    %c0_i32 = arith.constant 0 : i32
    %c0_i32_0 = arith.constant 0 : i32
    %c0_i32_1 = arith.constant 0 : i32
    return %c0_i32, %c0_i32_0 : i32, i32
  }
  func.func @transform_9(%arg0: i32) -> (i32, i32) {
    %c0_i32 = arith.constant 0 : i32
    %c0_i32_0 = arith.constant 0 : i32
    %c0_i32_1 = arith.constant 0 : i32
    return %c0_i32, %c0_i32_0 : i32, i32
  }
  func.func @transform_10(%arg0: i32) -> (i32, i32) {
    %c0_i32 = arith.constant 0 : i32
    %c0_i32_0 = arith.constant 0 : i32
    %c0_i32_1 = arith.constant 0 : i32
    return %c0_i32, %c0_i32_0 : i32, i32
  }
  func.func @transform_11(%arg0: i32) -> (i32, i32) {
    %c0_i32 = arith.constant 0 : i32
    %c0_i32_0 = arith.constant 0 : i32
    %c0_i32_1 = arith.constant 0 : i32
    return %c0_i32, %c0_i32_0 : i32, i32
  }
  func.func @transform_12(%arg0: i32) -> (i32, i32) {
    %c0_i32 = arith.constant 0 : i32
    %c0_i32_0 = arith.constant 0 : i32
    %c0_i32_1 = arith.constant 0 : i32
    return %c0_i32, %c0_i32_0 : i32, i32
  }
  func.func @transform_13(%arg0: i32) -> (i32, i32) {
    %c0_i32 = arith.constant 0 : i32
    %c0_i32_0 = arith.constant 0 : i32
    %c0_i32_1 = arith.constant 0 : i32
    return %c0_i32, %c0_i32_0 : i32, i32
  }
  func.func @transform_14(%arg0: i32) -> (i32, i32, i32) {
    %c0_i32 = arith.constant 0 : i32
    %c0_i32_0 = arith.constant 0 : i32
    %c0_i32_1 = arith.constant 0 : i32
    return %arg0, %c0_i32, %c0_i32_0 : i32, i32, i32
  }
}

</mosaic_0001>

<bundles_post_ra>
// kernel: tpu_custom_call.1
= control target key start
LH: loop header
LB: loop body
LE: loop exit
PB: predicated region body
PF: predicated region fallthrough
CT: control target
= control target key end

     0   :  { %19 = vsyncpa [#allocation3], 0  ;;  %s2825_s0 = inlined_call_operand.vmem [shape: f32[2,16,64], index: 0, kind: input, shape index: {}]   ;;  %s2826_s1 = inlined_call_operand.vmem [shape: f32[32,32], index: 1, kind: input, shape index: {}]   ;;  %s2827_s2 = inlined_call_operand.vmem [shape: f32[1,64], index: 2, kind: input, shape index: {}]   ;;  %s2828_s3 = inlined_call_operand.vmem [shape: f32[1,64], index: 3, kind: input, shape index: {}]   ;;  %s2829_s4 = inlined_call_operand.vmem [shape: bf16[64,192], index: 4, kind: input, shape index: {}]   ;;  %s2830_s5 = inlined_call_operand.vmem [shape: f32[1,192], index: 5, kind: input, shape index: {}]   ;;  %s2831_s6 = inlined_call_operand.hbm [shape: bf16[64,64], index: 6, kind: input, shape index: {}]   ;;  %s2832_s7 = inlined_call_operand.vmem [shape: f32[1,64], index: 7, kind: input, shape index: {}]   ;;  %s2833_s8 = inlined_call_operand.vmem [shape: f32[1,64], index: 8, kind: input, shape index: {}]   ;;  %s2834_s9 = inlined_call_operand.vmem [shape: f32[1,64], index: 9, kind: input, shape index: {}]   ;;  %s2835_s10 = inlined_call_operand.vmem [shape: bf16[64,256], index: 10, kind: input, shape index: {}]   ;;  %s2836_s11 = inlined_call_operand.vmem [shape: f32[1,256], index: 11, kind: input, shape index: {}]   ;;  %s2837_s12 = inlined_call_operand.vmem [shape: bf16[256,64], index: 12, kind: input, shape index: {}]   ;;  %s2838_s13 = inlined_call_operand.vmem [shape: f32[1,64], index: 13, kind: input, shape index: {}]   ;;  %s2839_s14 = inlined_call_operand.hbm [shape: f32[2,16,64], index: 14, kind: output, shape index: {}]  }
   0x1   :  { %20 = vsyncpa [#allocation4], 0  ;;  %s2188_s29 = smov [#allocation2]   ;;  %s2140_s17 = scalar_lea.hbm %s2831_s6, 512 }
   0x2   :  { %s38_s30 = sshll.u32 %s2188_s29, 4  ;;  %p2141_p0 = scmp.ne.s32.totalorder %s2831_s6, %s2140_s17  ;;  %s39_s30 = int_to_ptr.vmem [resolvable:$true] %s38_s30 }
   0x3   :  { %p2144_p1 = scmp.lt.u32.totalorder %s2140_s17, %s2831_s6 }
   0x5   :  { %p2146_p2 = pnand %p2144_p1, %p2141_p0 }
   0x7   :  { %2149 = shalt.err (!%p2146_p2)
}
   0x8   :  { %s2150_s22 = scalar_lea.vmem %s39_s30, 512  ;;  %p2155_p4 = scmp.lt.s32.totalorder %s39_s30, %s39_s30 }
   0x9   :  { %p2151_p3 = scmp.ne.s32.totalorder %s39_s30, %s2150_s22  ;;  %p2156_p5 = scmp.lt.s32.totalorder %s2150_s22, %s2150_s22 }
   0xb   :  { %p2157_p6 = por %p2156_p5, %p2155_p4 }
   0xd   :  { %p2158_p7 = pnand %p2157_p6, %p2151_p3 }
   0xf   :  { %2161 = shalt.err (!%p2158_p7)
}
  0x10   :  { %s2189_s23 = smov 64   ;;  %s2190_s24 = smov 4  }
  0x11   :  { %44 = dma.hbm_to_vmem [thread:$0]  %s2831_s6, 512, %s39_s30, [#allocation3], %s2189_s23, %s2189_s23, %s2190_s24  }
  0x12   :  { %2184 = dma.done.wait [#allocation3], 512  }
  0x13   :  { %2185 = vsyncadd [#allocation3], 4294966784  ;;  %vm69_vm0 = vcmask 523264   ;;  %v63_v0 = vld [vmem:[%s2825_s0] sm:$0xff]  ;;  %v65_v1 = vld [vmem:[%s2825_s0 + $0x10] sm:$0xff]  ;;  %v2191_v36 = vmov 0  }
  0x14   :  { %v64_v2 = vld [vmem:[%s2825_s0 + $0x8] sm:$0xff]  ;;  %v70_v3 = vsel %vm69_vm0, %v63_v0, 0.0  ;;  %v76_v4 = vsel %vm69_vm0, %v65_v1, 0.0  ;;  %v66_v5 = vld [vmem:[%s2825_s0 + $0x18] sm:$0xff]  ;;  %243 = vmatprep.mubr.bf16.mxu1 %v2191_v36  ;;  %v1679_v51 = vld [vmem:[%s2827_s2] ss:$0 sm:$0xff] }
  0x15   :  { %71 = vadd.xlane.f32.xlu0 %v70_v3  ;;  %77 = vadd.xlane.f32.xlu1 %v76_v4  ;;  %v73_v6 = vsel %vm69_vm0, %v64_v2, 0.0  ;;  %v79_v7 = vsel %vm69_vm0, %v66_v5, 0.0  ;;  %v1996_v28 = vld [vmem:[%s2829_s4 + $0x4] ss:$8 sps:$4 sm:$0xff]   ;;  %v1998_v29 = vld [vmem:[%s2829_s4] ss:$8 sps:$4 sm:$0xff]  }
  0x16   :  { %211 = vmatprep.subr.bf16.mxu1 %v1996_v28  ;;  %v1999_v30 = vld [vmem:[%s2829_s4 + $0x14] ss:$8 sps:$4 sm:$0xff]   ;;  %v2001_v31 = vld [vmem:[%s2829_s4 + $0x10] ss:$8 sps:$4 sm:$0xff]   ;;  %v2002_v32 = vld [vmem:[%s2829_s4 + $0x24] ss:$8 sps:$4 sm:$0xff]  }
  0x17   :  { %212 = vmatpush1.bf16.msra.mxu1 %v1998_v29  ;;  %v2004_v33 = vld [vmem:[%s2829_s4 + $0x20] ss:$8 sps:$4 sm:$0xff]   ;;  %v2005_v34 = vld [vmem:[%s2829_s4 + $0x34] ss:$8 sps:$4 sm:$0xff]   ;;  %v2007_v35 = vld [vmem:[%s2829_s4 + $0x30] ss:$8 sps:$4 sm:$0xff]  }
  0x18   :  { %213 = vmatprep.subr.bf16.mxu1 %v1999_v30  ;;  %v1680_v56 = vld [vmem:[%s2828_s3] ss:$0 sm:$0xff]  ;;  %vm362_vm1 = vcmask 130048   ;;  %s2193_s21 = smov 96   ;;  %s2194_s22 = smov 80   ;;  %vm625_vm2 = vcmask 261120  }
  0x19   :  { %74 = vadd.xlane.f32.xlu0 %v73_v6  ;;  %80 = vadd.xlane.f32.xlu1 %v79_v7  ;;  %s2196_s16 = smov 32   ;;  %s2197_s17 = smov 48   ;;  %vm1094_vm3 = vcmask 392192  }
  0x1b   :  { %214 = vmatpush1.bf16.msra.mxu1 %v2001_v31 }
  0x1c   :  { %215 = vmatprep.subr.bf16.mxu1 %v2002_v32 }
  0x1f   :  { %216 = vmatpush1.bf16.msra.mxu1 %v2004_v33 }
  0x20   :  { %217 = vmatprep.subr.bf16.mxu1 %v2005_v34 }
  0x23   :  { %218 = vmatpush1.bf16.msra.mxu1 %v2007_v35 }
  0xa2   :  { %v72_v8 = vpop.xlane.xlu0 %71  ;;  %v78_v9 = vpop.xlane.xlu1 %77 }
  0xa3   :  { %v83_v10 = vmul.f32 0.015625, %v72_v8  ;;  %v85_v11 = vmul.f32 0.015625, %v78_v9  ;;  %v153_v8 = vld [vmem:[%s2830_s5] sm:$0x3]  ;;  %s2192_s5 = smov 112  }
  0xa5   :  { %v87_v12 = vsub.f32 %v63_v0, %v83_v10  ;;  %v2306_v13 = vsub.f32 %v65_v1, %v85_v11 }
  0xa6   :  { %v75_v14 = vpop.xlane.xlu0 %74  ;;  %v81_v15 = vpop.xlane.xlu1 %80 }
  0xa7   :  { %v84_v16 = vmul.f32 0.015625, %v75_v14  ;;  %v86_v17 = vmul.f32 0.015625, %v81_v15  ;;  %v91_v18 = vmul.f32 %v87_v12, %v87_v12  ;;  %v93_v19 = vmul.f32 %v2306_v13, %v2306_v13 }
  0xa9   :  { %v88_v20 = vsub.f32 %v64_v2, %v84_v16  ;;  %v90_v21 = vsub.f32 %v66_v5, %v86_v17  ;;  %v95_v22 = vsel %vm69_vm0, %v91_v18, 0.0  ;;  %v101_v23 = vsel %vm69_vm0, %v93_v19, 0.0 }
  0xaa   :  { %96 = vadd.xlane.f32.xlu0 %v95_v22  ;;  %v155_v5 = vlaneseq }
  0xab   :  { %v92_v24 = vmul.f32 %v88_v20, %v88_v20  ;;  %v94_v25 = vmul.f32 %v90_v21, %v90_v21 }
  0xac   :  { %v2349_v6 = vshrl.u32 %v155_v5, 7 }
  0xad   :  { %v98_v26 = vsel %vm69_vm0, %v92_v24, 0.0  ;;  %v104_v27 = vsel %vm69_vm0, %v94_v25, 0.0 }
  0xae   :  { %102 = vadd.xlane.f32.xlu0 %v101_v23  ;;  %99 = vadd.xlane.f32.xlu1 %v98_v26  ;;  %v157_v7 = vsub.s32 0, %v2349_v6  ;;  %v161_v9 = vsub.s32 1, %v2349_v6 }
  0xb0   :  { %v158_v10 = vrot.slane %v153_v8, %v157_v7 }
  0xb2   :  { %105 = vadd.xlane.f32.xlu1 %v104_v27 }
 0x137   :  { %v97_v37 = vpop.xlane.xlu0 %96 }
 0x138   :  { %v107_v38 = vmul.f32 0.015625, %v97_v37 }
 0x13a   :  { %v111_v39 = vadd.f32 1e-05, %v107_v38 }
 0x13b   :  { %v100_v40 = vpop.xlane.xlu1 %99  ;;  %v103_v41 = vpop.xlane.xlu0 %102 }
 0x13c   :  { %2040 = vrsqrt.f32 %v111_v39  ;;  %v108_v42 = vmul.f32 0.015625, %v100_v40  ;;  %v109_v43 = vmul.f32 0.015625, %v103_v41 }
 0x13e   :  { %v112_v44 = vadd.f32 1e-05, %v108_v42  ;;  %v113_v45 = vadd.f32 1e-05, %v109_v43 }
 0x13f   :  { %v106_v46 = vpop.xlane.xlu1 %105 }
 0x140   :  { %2042 = vrsqrt.f32 %v112_v44  ;;  %v110_v47 = vmul.f32 0.015625, %v106_v46 }
 0x141   :  { %2044 = vrsqrt.f32 %v113_v45 }
 0x142   :  { %v114_v48 = vadd.f32 1e-05, %v110_v47 }
 0x144   :  { %2046 = vrsqrt.f32 %v114_v48 }
 0x146   :  { %v2041_v49 = vpop.eup %2040 }
 0x147   :  { %v119_v50 = vmul.f32 %v2041_v49, %v87_v12  ;;  %v162_v12 = vrot.slane %v153_v8, %v161_v9 }
 0x149   :  { %v129_v54 = vmul.f32 %v1679_v51, %v119_v50 }
 0x14a   :  { %v2043_v52 = vpop.eup %2042 }
 0x14b   :  { %v120_v53 = vmul.f32 %v2043_v52, %v88_v20  ;;  %v2045_v55 = vpop.eup %2044  ;;  %v139_v61 = vadd.f32 %v1680_v56, %v129_v54 }
 0x14c   :  { %v121_v59 = vmul.f32 %v2045_v55, %v2306_v13 }
 0x14d   :  { %v130_v57 = vmul.f32 %v1679_v51, %v120_v53 }
 0x14e   :  { %v2047_v58 = vpop.eup %2046  ;;  %v131_v1 = vmul.f32 %v1679_v51, %v121_v59 }
 0x14f   :  { %v122_v60 = vmul.f32 %v2047_v58, %v90_v21  ;;  %v140_v62 = vadd.f32 %v1680_v56, %v130_v57 }
 0x150   :  { %v141_v3 = vadd.f32 %v1680_v56, %v131_v1 }
 0x151   :  { %v143_v63 = vpack.c.bf16 %v140_v62, %v139_v61  ;;  %v132_v0 = vmul.f32 %v1679_v51, %v122_v60 }
 0x153   :  { %1689 = vmatmul.mubr.msk.bf16.vlgmr.msra.gmra.mrb[0].mxu1 %vm69_vm0, %v143_v63  ;;  %v142_v2 = vadd.f32 %v1680_v56, %v132_v0 }
 0x154   :  { %253 = vmatprep.mubr.bf16.mxu1 %v2191_v36 }
 0x155   :  { %v144_v4 = vpack.c.bf16 %v142_v2, %v141_v3 }
 0x15b   :  { %1690 = vmatmul.mubr.msk.bf16.gmra.mrb[4].mxu1 %vm69_vm0, %v144_v4 }
 0x226   :  { %v245_v11 = vpop.f32.mrb[0].mxu1 }
 0x227   :  { %v247_v13 = vpop.f32.mrb[1].mxu1  ;;  %v246_v15 = vadd.f32 %v245_v11, %v158_v10 }
 0x228   :  { %v249_v14 = vpop.f32.mrb[2].mxu1  ;;  %v248_v18 = vadd.f32 %v247_v13, %v162_v12 }
 0x229   :  { %v250_v16 = vadd.f32 %v249_v14, %v158_v10  ;;  %v251_v17 = vpop.f32.mrb[3].mxu1 }
 0x22a   :  { %v252_v19 = vadd.f32 %v251_v17, %v162_v12 }
 0x22b   :  { %v1906_v20 = vpack.i.bf16 %v250_v16, %v246_v15  ;;  %v344_v21 = vpack.c.bf16 %v250_v16, %v246_v15  ;;  %v354_v16 = vld [vmem:[%s2826_s1 + $0x10] sm:$0xff] }
 0x22c   :  { %v2360_v22 = vpack.c.bf16 %v252_v19, %v248_v18  ;;  %v2362_v23 = vpack.i.bf16 %v252_v19, %v248_v18  ;;  %v352_v18 = vld [vmem:[%s2826_s1] sm:$0xff] }
 0x22d   :  { %1907 = vrot.lane.b32.xlu0 %v1906_v20, %s2192_s5  ;;  %1813 = vmatprep.mubr.msk.bf16.mxu1 %vm362_vm1, %v344_v21 }
 0x22e   :  { %v255_v24 = vpop.f32.mrb[4].mxu1 }
 0x22f   :  { %v257_v25 = vpop.f32.mrb[5].mxu1  ;;  %v256_v27 = vadd.f32 %v255_v24, %v158_v10 }
 0x230   :  { %v259_v26 = vpop.f32.mrb[6].mxu1  ;;  %v258_v30 = vadd.f32 %v257_v25, %v162_v12 }
 0x231   :  { %v260_v28 = vadd.f32 %v259_v26, %v158_v10  ;;  %v261_v29 = vpop.f32.mrb[7].mxu1 }
 0x232   :  { %v262_v31 = vadd.f32 %v261_v29, %v162_v12 }
 0x233   :  { %v1926_v32 = vpack.i.bf16 %v260_v28, %v256_v27  ;;  %v345_v33 = vpack.c.bf16 %v260_v28, %v256_v27  ;;  %v2430_v27 = vld [vmem:[%s2826_s1 + $0x18] sm:$0xff] }
 0x234   :  { %v2366_v34 = vpack.c.bf16 %v262_v31, %v258_v30  ;;  %v2368_v35 = vpack.i.bf16 %v262_v31, %v258_v30 }
 0x235   :  { %1927 = vrot.lane.b32.xlu0 %v1926_v32, %s2193_s21  ;;  %1912 = vrot.lane.b32.xlu1 %v1926_v32, %s2192_s5 }
 0x239   :  { %358 = vrot.lane.b32.xlu0 %v344_v21, %s2189_s23  ;;  %1917 = vrot.lane.b32.xlu1 %v1906_v20, %s2193_s21  ;;  %v2421_v21 = vld [vmem:[%s2826_s1 + $0x8] sm:$0xff]  ;;  %s2195_s1 = smov 16  }
 0x23d   :  { %1922 = vrot.lane.b32.xlu1 %v1906_v20, %s2194_s22  ;;  %360 = vrot.lane.b32.xlu0 %v345_v33, %s2189_s23 }
 0x241   :  { %1932 = vrot.lane.b32.xlu1 %v1926_v32, %s2194_s22 }
 0x29f   :  { %v1908_v37 = vpop.permute.xlu0 %1907 }
 0x2a0   :  { %v1910_v38 = vunpack.i.h.bf16 %v1908_v37  ;;  %v1909_v39 = vunpack.i.l.bf16 %v1908_v37 }
 0x2a2   :  { %v346_v40 = vpack.c.bf16 %v1910_v38, %v1909_v39 }
 0x2a4   :  { %426 = vrot.lane.b32.xlu1 %v346_v40, %s2189_s23  ;;  %1821 = vmatprep.mubr.msk.bf16.mxu0 %vm362_vm1, %v346_v40 }
 0x2a7   :  { %v1913_v41 = vpop.permute.xlu1 %1912  ;;  %v1928_v42 = vpop.permute.xlu0 %1927 }
 0x2a8   :  { %v1915_v43 = vunpack.i.h.bf16 %v1913_v41  ;;  %v1914_v44 = vunpack.i.l.bf16 %v1913_v41  ;;  %v1930_v51 = vunpack.i.h.bf16 %v1928_v42  ;;  %v1929_v52 = vunpack.i.l.bf16 %v1928_v42 }
 0x2aa   :  { %v347_v45 = vpack.c.bf16 %v1915_v43, %v1914_v44  ;;  %v349_v58 = vpack.c.bf16 %v1930_v51, %v1929_v52 }
 0x2ab   :  { %v1918_v46 = vpop.permute.xlu1 %1917  ;;  %v359_v47 = vpop.permute.xlu0 %358 }
 0x2ac   :  { %v1920_v48 = vunpack.i.h.bf16 %v1918_v46  ;;  %v1919_v49 = vunpack.i.l.bf16 %v1918_v46  ;;  %v370_v50 = vsel %vm362_vm1, %v359_v47, 0  ;;  %1885 = vmatprep.subr.msk.bf16.mxu1 %vm362_vm1, %v359_v47  ;;  %428 = vrot.lane.b32.xlu1 %v347_v45, %s2189_s23 }
 0x2ad   :  { %1810 = vmatpush3.bf16.xpose.msra.mxu1 %v370_v50 }
 0x2ae   :  { %v348_v53 = vpack.c.bf16 %v1920_v48, %v1919_v49 }
 0x2af   :  { %v1923_v54 = vpop.permute.xlu1 %1922  ;;  %v361_v55 = vpop.permute.xlu0 %360 }
 0x2b0   :  { %v1925_v56 = vunpack.i.h.bf16 %v1923_v54  ;;  %v1924_v57 = vunpack.i.l.bf16 %v1923_v54  ;;  %493 = vrot.lane.b32.xlu0 %v348_v53, %s2189_s23  ;;  %1886 = vmatprep.subr.msk.bf16.mxu1 %vm362_vm1, %v361_v55  ;;  %v373_v61 = vsel %vm362_vm1, %v361_v55, 0 }
 0x2b2   :  { %v350_v59 = vpack.c.bf16 %v1925_v56, %v1924_v57 }
 0x2b3   :  { %v1933_v60 = vpop.permute.xlu1 %1932 }
 0x2b4   :  { %v1935_v62 = vunpack.i.h.bf16 %v1933_v60  ;;  %v1934_v63 = vunpack.i.l.bf16 %v1933_v60  ;;  %495 = vrot.lane.b32.xlu0 %v349_v58, %s2189_s23  ;;  %560 = vrot.lane.b32.xlu1 %v350_v59, %s2189_s23 }
 0x2b5   :  { %1812 = vmatpush3.bf16.xpose.msra.mxu1 %v373_v61 }
 0x2b6   :  { %v351_v0 = vpack.c.bf16 %v1935_v62, %v1934_v63 }
 0x2b8   :  { %562 = vrot.lane.b32.xlu1 %v351_v0, %s2189_s23 }
 0x2bc   :  { %1814 = vmatmul.mubr.msk.bf16.vlgmr.msra.gmra.mrb[8].mxu1 %vm362_vm1, %v345_v33 }
 0x2bd   :  { %1829 = vmatprep.mubr.msk.bf16.mxu1 %vm362_vm1, %v348_v53 }
 0x316   :  { %v427_v1 = vpop.permute.xlu1 %426 }
 0x317   :  { %1887 = vmatprep.subr.msk.bf16.mxu0 %vm362_vm1, %v427_v1  ;;  %v437_v2 = vsel %vm362_vm1, %v427_v1, 0 }
 0x318   :  { %1818 = vmatpush3.bf16.xpose.msra.mxu0 %v437_v2 }
 0x31e   :  { %v429_v3 = vpop.permute.xlu1 %428 }
 0x31f   :  { %1888 = vmatprep.subr.msk.bf16.mxu0 %vm362_vm1, %v429_v3  ;;  %v440_v4 = vsel %vm362_vm1, %v429_v3, 0 }
 0x320   :  { %1820 = vmatpush3.bf16.xpose.msra.mxu0 %v440_v4 }
 0x322   :  { %v494_v5 = vpop.permute.xlu0 %493 }
 0x323   :  { %v504_v8 = vsel %vm362_vm1, %v494_v5, 0  ;;  %1889 = vmatprep.subr.msk.bf16.mxu1 %vm362_vm1, %v494_v5 }
 0x324   :  { %1826 = vmatpush3.bf16.xpose.msra.mxu1 %v504_v8 }
 0x326   :  { %v496_v10 = vpop.permute.xlu0 %495  ;;  %v561_v11 = vpop.permute.xlu1 %560 }
 0x327   :  { %v571_v12 = vsel %vm362_vm1, %v561_v11, 0  ;;  %1822 = vmatmul.mubr.msk.bf16.vlgmr.msra.gmra.mrb[0].mxu0 %vm362_vm1, %v347_v45  ;;  %1890 = vmatprep.subr.msk.bf16.mxu1 %vm362_vm1, %v496_v10  ;;  %v507_v14 = vsel %vm362_vm1, %v496_v10, 0 }
 0x328   :  { %1891 = vmatprep.subr.msk.bf16.mxu0 %vm362_vm1, %v561_v11  ;;  %1837 = vmatprep.mubr.msk.bf16.mxu0 %vm362_vm1, %v350_v59 }
 0x329   :  { %1834 = vmatpush3.bf16.xpose.msra.mxu0 %v571_v12 }
 0x32a   :  { %v563_v13 = vpop.permute.xlu1 %562 }
 0x32b   :  { %1892 = vmatprep.subr.msk.bf16.mxu0 %vm362_vm1, %v563_v13  ;;  %v574_v15 = vsel %vm362_vm1, %v563_v13, 0 }
 0x32c   :  { %1828 = vmatpush3.bf16.xpose.msra.mxu1 %v507_v14 }
 0x32d   :  { %1841 = vmatprep.subr.bf16.mxu1 %v2360_v22 }
 0x331   :  { %1836 = vmatpush3.bf16.xpose.msra.mxu0 %v574_v15 }
 0x333   :  { %1830 = vmatmul.mubr.msk.bf16.vlgmr.msra.gmra.mrb[12].mxu1 %vm362_vm1, %v349_v58 }
 0x334   :  { %1842 = vmatpush3.bf16.msra.mxu1 %v2360_v22 }
 0x335   :  { %1843 = vmatprep.subr.bf16.mxu1 %v2366_v34 }
 0x338   :  { %1838 = vmatmul.mubr.msk.bf16.vlgmr.msra.gmra.mrb[4].mxu0 %vm362_vm1, %v351_v0  ;;  %1844 = vmatpush3.bf16.msra.mxu1 %v2366_v34 }
 0x38f   :  { %v1815_v17 = vpop.f32.mrb[8].mxu1 }
 0x390   :  { %v2416_v19 = vadd.f32 %v1815_v17, %v354_v16  ;;  %v409_v20 = vpop.f32.mrb[9].mxu1 }
 0x391   :  { %v1816_v22 = vpop.f32.mrb[10].mxu1  ;;  %v2423_v24 = vadd.f32 %v409_v20, %v352_v18 }
 0x392   :  { %v412_v25 = vpop.f32.mrb[11].mxu1  ;;  %v632_v26 = vsel %vm625_vm2, %v2416_v19, -inf  ;;  %v2438_v30 = vadd.f32 %v1816_v22, %v2430_v27 }
 0x393   :  { %v2433_v28 = vadd.f32 %v412_v25, %v2421_v21  ;;  %633 = vmax.xlane.f32.xlu0 %v632_v26  ;;  %v626_v31 = vsel %vm625_vm2, %v2423_v24, -inf }
 0x394   :  { %v635_v32 = vsel %vm625_vm2, %v2438_v30, -inf }
 0x395   :  { %v629_v29 = vsel %vm625_vm2, %v2433_v28, -inf }
 0x396   :  { %630 = vmax.xlane.f32.xlu1 %v629_v29 }
 0x397   :  { %627 = vmax.xlane.f32.xlu0 %v626_v31 }
 0x39b   :  { %636 = vmax.xlane.f32.xlu0 %v635_v32 }
 0x3fa   :  { %v1823_v33 = vpop.f32.mrb[0].mxu0 }
 0x3fb   :  { %v2444_v34 = vadd.f32 %v1823_v33, %v354_v16  ;;  %v476_v37 = vpop.f32.mrb[1].mxu0 }
 0x3fc   :  { %v1824_v38 = vpop.f32.mrb[2].mxu0  ;;  %v2455_v47 = vadd.f32 %v476_v37, %v352_v18 }
 0x3fd   :  { %v2447_v39 = vadd.f32 %v1824_v38, %v2430_v27  ;;  %v479_v40 = vpop.f32.mrb[3].mxu0  ;;  %v644_v41 = vsel %vm625_vm2, %v2444_v34, -inf }
 0x3fe   :  { %645 = vmax.xlane.f32.xlu0 %v644_v41  ;;  %v2463_v51 = vadd.f32 %v479_v40, %v2421_v21  ;;  %v638_v57 = vsel %vm625_vm2, %v2455_v47, -inf }
 0x3ff   :  { %v647_v42 = vsel %vm625_vm2, %v2447_v39, -inf }
 0x400   :  { %648 = vmax.xlane.f32.xlu1 %v647_v42  ;;  %v641_v60 = vsel %vm625_vm2, %v2463_v51, -inf }
 0x406   :  { %v1831_v43 = vpop.f32.mrb[12].mxu1 }
 0x407   :  { %v2453_v44 = vadd.f32 %v1831_v43, %v354_v16  ;;  %v543_v45 = vpop.f32.mrb[13].mxu1 }
 0x408   :  { %v1832_v46 = vpop.f32.mrb[14].mxu1  ;;  %v2467_v55 = vadd.f32 %v543_v45, %v352_v18 }
 0x409   :  { %v2458_v48 = vadd.f32 %v1832_v46, %v2430_v27  ;;  %v546_v49 = vpop.f32.mrb[15].mxu1  ;;  %v656_v50 = vsel %vm625_vm2, %v2453_v44, -inf }
 0x40a   :  { %657 = vmax.xlane.f32.xlu0 %v656_v50  ;;  %v2472_v59 = vadd.f32 %v546_v49, %v2421_v21  ;;  %v650_v62 = vsel %vm625_vm2, %v2467_v55, -inf }
 0x40b   :  { %v1839_v52 = vpop.f32.mrb[4].mxu0  ;;  %v659_v53 = vsel %vm625_vm2, %v2458_v48, -inf }
 0x40c   :  { %v610_v54 = vpop.f32.mrb[5].mxu0  ;;  %660 = vmax.xlane.f32.xlu1 %v659_v53  ;;  %v2476_v61 = vadd.f32 %v1839_v52, %v354_v16  ;;  %v653_v63 = vsel %vm625_vm2, %v2472_v59, -inf }
 0x40d   :  { %v1840_v56 = vpop.f32.mrb[6].mxu0  ;;  %v2482_v0 = vadd.f32 %v610_v54, %v352_v18 }
 0x40e   :  { %v613_v58 = vpop.f32.mrb[7].mxu0  ;;  %639 = vmax.xlane.f32.xlu0 %v638_v57  ;;  %v668_v1 = vsel %vm625_vm2, %v2476_v61, -inf  ;;  %v2497_v12 = vadd.f32 %v1840_v56, %v2430_v27 }
 0x40f   :  { %v662_v2 = vsel %vm625_vm2, %v2482_v0, -inf  ;;  %v2502_v14 = vadd.f32 %v613_v58, %v2421_v21 }
 0x410   :  { %642 = vmax.xlane.f32.xlu1 %v641_v60  ;;  %v671_v15 = vsel %vm625_vm2, %v2497_v12, -inf }
 0x411   :  { %v665_v18 = vsel %vm625_vm2, %v2502_v14, -inf }
 0x412   :  { %651 = vmax.xlane.f32.xlu0 %v650_v62 }
 0x414   :  { %654 = vmax.xlane.f32.xlu1 %v653_v63 }
 0x416   :  { %669 = vmax.xlane.f32.xlu0 %v668_v1 }
 0x41a   :  { %663 = vmax.xlane.f32.xlu0 %v662_v2 }
 0x420   :  { %v634_v3 = vpop.xlane.xlu0 %633 }
 0x421   :  { %v676_v4 = vsub.f32 %v2416_v19, %v634_v3 }
 0x423   :  { %v694_v8 = vmul.f32 1.442695, %v676_v4  ;;  %v631_v22 = vpop.xlane.xlu1 %630 }
 0x424   :  { %v628_v5 = vpop.xlane.xlu0 %627 }
 0x425   :  { %1942 = vrot.lane.b32.xlu1 %v2368_v35, %s2192_s5  ;;  %v674_v10 = vsub.f32 %v2423_v24, %v628_v5  ;;  %2048 = vpow2.f32 %v694_v8  ;;  %v675_v24 = vsub.f32 %v2433_v28, %v631_v22 }
 0x427   :  { %v690_v11 = vmul.f32 1.442695, %v674_v10  ;;  %v692_v26 = vmul.f32 1.442695, %v675_v24 }
 0x428   :  { %v637_v20 = vpop.xlane.xlu0 %636 }
 0x429   :  { %1947 = vrot.lane.b32.xlu1 %v2362_v23, %s2193_s21  ;;  %2050 = vpow2.f32 %v690_v11  ;;  %v677_v21 = vsub.f32 %v2438_v30, %v637_v20 }
 0x42b   :  { %v696_v25 = vmul.f32 1.442695, %v677_v21 }
 0x42d   :  { %2052 = vpow2.f32 %v696_v25 }
 0x42e   :  { %2054 = vpow2.f32 %v692_v26 }
 0x42f   :  { %v2499_v13 = vpop.eup %2048 }
 0x430   :  { %1937 = vrot.lane.b32.xlu0 %v2362_v23, %s2192_s5  ;;  %v728_v16 = vsel %vm625_vm2, %v2499_v13, 0.0 }
 0x433   :  { %v2508_v17 = vpop.eup %2050 }
 0x434   :  { %v722_v19 = vsel %vm625_vm2, %v2508_v17, 0.0 }
 0x437   :  { %v2518_v27 = vpop.eup %2052 }
 0x438   :  { %v731_v29 = vsel %vm625_vm2, %v2518_v27, 0.0  ;;  %v2522_v31 = vpop.eup %2054 }
 0x44d   :  { %672 = vmax.xlane.f32.xlu1 %v671_v15 }
 0x44f   :  { %729 = vadd.xlane.f32.xlu0 %v728_v16 }
 0x451   :  { %666 = vmax.xlane.f32.xlu1 %v665_v18 }
 0x453   :  { %723 = vadd.xlane.f32.xlu0 %v722_v19 }
 0x462   :  { %1952 = vrot.lane.b32.xlu1 %v2362_v23, %s2194_s22  ;;  %v725_v23 = vsel %vm625_vm2, %v2522_v31, 0.0 }
 0x486   :  { %732 = vadd.xlane.f32.xlu1 %v731_v29 }
 0x48a   :  { %726 = vadd.xlane.f32.xlu1 %v725_v23 }
 0x48b   :  { %v646_v30 = vpop.xlane.xlu0 %645 }
 0x48c   :  { %v680_v32 = vsub.f32 %v2444_v34, %v646_v30 }
 0x48d   :  { %v649_v28 = vpop.xlane.xlu1 %648 }
 0x48e   :  { %v702_v33 = vmul.f32 1.442695, %v680_v32  ;;  %v681_v37 = vsub.f32 %v2447_v39, %v649_v28 }
 0x490   :  { %2056 = vpow2.f32 %v702_v33  ;;  %v704_v38 = vmul.f32 1.442695, %v681_v37 }
 0x492   :  { %2058 = vpow2.f32 %v704_v38 }
 0x497   :  { %v658_v40 = vpop.xlane.xlu0 %657 }
 0x498   :  { %v684_v41 = vsub.f32 %v2453_v44, %v658_v40 }
 0x499   :  { %v661_v42 = vpop.xlane.xlu1 %660 }
 0x49a   :  { %v2529_v43 = vpop.eup %2056  ;;  %v710_v45 = vmul.f32 1.442695, %v684_v41  ;;  %v685_v46 = vsub.f32 %v2458_v48, %v661_v42 }
 0x49b   :  { %v640_v49 = vpop.xlane.xlu0 %639  ;;  %v740_v34 = vsel %vm625_vm2, %v2529_v43, 0.0 }
 0x49c   :  { %v2534_v50 = vpop.eup %2058  ;;  %2060 = vpow2.f32 %v710_v45  ;;  %v712_v39 = vmul.f32 1.442695, %v685_v46  ;;  %v678_v52 = vsub.f32 %v2455_v47, %v640_v49  ;;  %741 = vadd.xlane.f32.xlu0 %v740_v34 }
 0x49d   :  { %v643_v53 = vpop.xlane.xlu1 %642  ;;  %v743_v44 = vsel %vm625_vm2, %v2534_v50, 0.0 }
 0x49e   :  { %2062 = vpow2.f32 %v712_v39  ;;  %v698_v54 = vmul.f32 1.442695, %v678_v52  ;;  %v679_v56 = vsub.f32 %v2463_v51, %v643_v53  ;;  %744 = vadd.xlane.f32.xlu1 %v743_v44 }
 0x49f   :  { %v652_v48 = vpop.xlane.xlu0 %651 }
 0x4a0   :  { %2064 = vpow2.f32 %v698_v54  ;;  %v700_v57 = vmul.f32 1.442695, %v679_v56  ;;  %v682_v58 = vsub.f32 %v2467_v55, %v652_v48 }
 0x4a1   :  { %v655_v60 = vpop.xlane.xlu1 %654 }
 0x4a2   :  { %2066 = vpow2.f32 %v700_v57  ;;  %v706_v62 = vmul.f32 1.442695, %v682_v58  ;;  %v683_v47 = vsub.f32 %v2472_v59, %v655_v60 }
 0x4a3   :  { %v670_v63 = vpop.xlane.xlu0 %669 }
 0x4a4   :  { %2068 = vpow2.f32 %v706_v62  ;;  %v708_v1 = vmul.f32 1.442695, %v683_v47  ;;  %v688_v2 = vsub.f32 %v2476_v61, %v670_v63 }
 0x4a5   :  { %v2543_v3 = vpop.permute.xlu1 %1942 }
 0x4a6   :  { %v2545_v4 = vpop.eup %2060  ;;  %2070 = vpow2.f32 %v708_v1  ;;  %v718_v51 = vmul.f32 1.442695, %v688_v2  ;;  %v1944_v1 = vunpack.i.l.bf16 %v2543_v3 }
 0x4a7   :  { %v664_v5 = vpop.xlane.xlu0 %663  ;;  %v752_v55 = vsel %vm625_vm2, %v2545_v4, 0.0 }
 0x4a8   :  { %v2549_v8 = vpop.eup %2062  ;;  %2072 = vpow2.f32 %v718_v51  ;;  %v686_v59 = vsub.f32 %v2482_v0, %v664_v5  ;;  %753 = vadd.xlane.f32.xlu0 %v752_v55 }
 0x4a9   :  { %v1948_v10 = vpop.permute.xlu1 %1947  ;;  %v755_v61 = vsel %vm625_vm2, %v2549_v8, 0.0 }
 0x4aa   :  { %v2554_v11 = vpop.eup %2064  ;;  %v714_v15 = vmul.f32 1.442695, %v686_v59  ;;  %v1950_v16 = vunpack.i.h.bf16 %v1948_v10  ;;  %v1949_v18 = vunpack.i.l.bf16 %v1948_v10  ;;  %756 = vadd.xlane.f32.xlu1 %v755_v61 }
 0x4ab   :  { %v1938_v19 = vpop.permute.xlu0 %1937  ;;  %v734_v20 = vsel %vm625_vm2, %v2554_v11, 0.0 }
 0x4ac   :  { %v2558_v21 = vpop.eup %2066  ;;  %2074 = vpow2.f32 %v714_v15  ;;  %v814_v22 = vpack.c.bf16 %v1950_v16, %v1949_v18  ;;  %v1940_v0 = vunpack.i.h.bf16 %v1938_v19  ;;  %v1939_v24 = vunpack.i.l.bf16 %v1938_v19  ;;  %735 = vadd.xlane.f32.xlu0 %v734_v20 }
 0x4ad   :  { %v737_v25 = vsel %vm625_vm2, %v2558_v21, 0.0 }
 0x4ae   :  { %v2562_v26 = vpop.eup %2068  ;;  %v812_v29 = vpack.c.bf16 %v1940_v0, %v1939_v24  ;;  %738 = vadd.xlane.f32.xlu1 %v737_v25  ;;  %1857 = vmatprep.subr.bf16.mxu0 %v814_v22 }
 0x4af   :  { %1858 = vmatpush3.bf16.msra.mxu0 %v814_v22  ;;  %v746_v23 = vsel %vm625_vm2, %v2562_v26, 0.0 }
 0x4b0   :  { %v2566_v30 = vpop.eup %2070  ;;  %747 = vadd.xlane.f32.xlu0 %v746_v23  ;;  %1849 = vmatprep.subr.bf16.mxu1 %v812_v29 }
 0x4b1   :  { %v749_v32 = vsel %vm625_vm2, %v2566_v30, 0.0 }
 0x4b2   :  { %v2570_v28 = vpop.eup %2072  ;;  %750 = vadd.xlane.f32.xlu1 %v749_v32 }
 0x4b3   :  { %v764_v33 = vsel %vm625_vm2, %v2570_v28, 0.0 }
 0x4b4   :  { %765 = vadd.xlane.f32.xlu0 %v764_v33 }
 0x4b6   :  { %v2574_v37 = vpop.eup %2074 }
 0x4b7   :  { %v758_v38 = vsel %vm625_vm2, %v2574_v37, 0.0 }
 0x4b8   :  { %759 = vadd.xlane.f32.xlu0 %v758_v38 }
 0x4ce   :  { %1957 = vrot.lane.b32.xlu0 %v2368_v35, %s2193_s21 }
 0x4da   :  { %v673_v40 = vpop.xlane.xlu1 %672 }
 0x4db   :  { %v689_v41 = vsub.f32 %v2497_v12, %v673_v40 }
 0x4dc   :  { %v730_v12 = vpop.xlane.xlu0 %729 }
 0x4dd   :  { %v720_v42 = vmul.f32 1.442695, %v689_v41 }
 0x4de   :  { %v667_v45 = vpop.xlane.xlu1 %666 }
 0x4df   :  { %2076 = vpow2.f32 %v720_v42  ;;  %v687_v46 = vsub.f32 %v2502_v14, %v667_v45 }
 0x4e0   :  { %v724_v14 = vpop.xlane.xlu0 %723 }
 0x4e1   :  { %v716_v49 = vmul.f32 1.442695, %v687_v46 }
 0x4e2   :  { %v1953_v44 = vpop.permute.xlu1 %1952 }
 0x4e3   :  { %2078 = vpow2.f32 %v716_v49  ;;  %v1955_v59 = vunpack.i.h.bf16 %v1953_v44  ;;  %v1954_v10 = vunpack.i.l.bf16 %v1953_v44 }
 0x4e9   :  { %v2582_v34 = vpop.eup %2076 }
 0x4ea   :  { %v767_v39 = vsel %vm625_vm2, %v2582_v34, 0.0 }
 0x4eb   :  { %768 = vadd.xlane.f32.xlu1 %v767_v39 }
 0x4ed   :  { %v2586_v52 = vpop.eup %2078 }
 0x4ee   :  { %v761_v53 = vsel %vm625_vm2, %v2586_v52, 0.0 }
 0x4ef   :  { %762 = vadd.xlane.f32.xlu1 %v761_v53 }
 0x500   :  { %1962 = vrot.lane.b32.xlu1 %v2368_v35, %s2194_s22  ;;  %v1945_v35 = vunpack.i.h.bf16 %v2543_v3 }
 0x502   :  { %v813_v55 = vpack.c.bf16 %v1945_v35, %v1944_v1 }
 0x513   :  { %v733_v54 = vpop.xlane.xlu1 %732 }
 0x514   :  { %2080 = vrcp.f32 %v733_v54 }
 0x515   :  { %2082 = vrcp.f32 %v724_v14 }
 0x516   :  { %2084 = vrcp.f32 %v730_v12 }
 0x517   :  { %v727_v56 = vpop.xlane.xlu1 %726 }
 0x518   :  { %2086 = vrcp.f32 %v727_v56 }
 0x51e   :  { %v2081_v48 = vpop.eup %2080 }
 0x51f   :  { %v2083_v57 = vpop.eup %2082  ;;  %v789_v62 = vmul.f32 %v2081_v48, %v2518_v27 }
 0x520   :  { %v2085_v58 = vpop.eup %2084  ;;  %v786_v47 = vmul.f32 %v2083_v57, %v2508_v17  ;;  %v816_v17 = vpack.c.bf16 %v1955_v59, %v1954_v10 }
 0x521   :  { %v788_v2 = vmul.f32 %v2085_v58, %v2499_v13 }
 0x522   :  { %v2087_v60 = vpop.eup %2086 }
 0x523   :  { %v787_v63 = vmul.f32 %v2087_v60, %v2522_v31  ;;  %v803_v5 = vpack.c.bf16 %v789_v62, %v788_v2 }
 0x525   :  { %v802_v51 = vpack.c.bf16 %v787_v63, %v786_v47 }
 0x527   :  { %1845 = vmatprep.mubr.msk.bf16.mxu1 %vm625_vm2, %v802_v51 }
 0x528   :  { %1846 = vmatmul.mubr.msk.bf16.vlgmr.msra.gmra.mrb[16].mxu1 %vm625_vm2, %v803_v5 }
 0x529   :  { %1850 = vmatpush3.bf16.msra.mxu1 %v812_v29  ;;  %v742_v27 = vpop.xlane.xlu0 %741 }
 0x52a   :  { %1851 = vmatprep.subr.bf16.mxu1 %v813_v55 }
 0x52b   :  { %v745_v31 = vpop.xlane.xlu1 %744 }
 0x52c   :  { %2088 = vrcp.f32 %v745_v31 }
 0x52d   :  { %1852 = vmatpush3.bf16.msra.mxu1 %v813_v55 }
 0x52e   :  { %1865 = vmatprep.subr.bf16.mxu1 %v816_v17 }
 0x535   :  { %v754_v61 = vpop.xlane.xlu0 %753 }
 0x536   :  { %v2089_v20 = vpop.eup %2088 }
 0x537   :  { %v757_v3 = vpop.xlane.xlu1 %756  ;;  %v793_v29 = vmul.f32 %v2089_v20, %v2534_v50  ;;  %v2011_v20 = vld [vmem:[#allocation2 + $0x18] sm:$0xff]  }
 0x539   :  { %v736_v13 = vpop.xlane.xlu0 %735 }
 0x53a   :  { %2090 = vrcp.f32 %v736_v13 }
 0x53b   :  { %2092 = vrcp.f32 %v742_v27  ;;  %v739_v15 = vpop.xlane.xlu1 %738 }
 0x53c   :  { %2094 = vrcp.f32 %v739_v15 }
 0x53d   :  { %v748_v16 = vpop.xlane.xlu0 %747 }
 0x53e   :  { %2096 = vrcp.f32 %v748_v16 }
 0x53f   :  { %2098 = vrcp.f32 %v757_v3  ;;  %v751_v18 = vpop.xlane.xlu1 %750 }
 0x540   :  { %2100 = vrcp.f32 %v751_v18 }
 0x541   :  { %2102 = vrcp.f32 %v754_v61  ;;  %v766_v19 = vpop.xlane.xlu0 %765  ;;  %v2010_v61 = vld [vmem:[#allocation2 + $0x10] sm:$0xff]  }
 0x544   :  { %v2091_v22 = vpop.eup %2090 }
 0x545   :  { %v2093_v0 = vpop.eup %2092  ;;  %v760_v24 = vpop.xlane.xlu0 %759  ;;  %v790_v23 = vmul.f32 %v2091_v22, %v2554_v11 }
 0x546   :  { %v2095_v25 = vpop.eup %2094  ;;  %v792_v38 = vmul.f32 %v2093_v0, %v2529_v43 }
 0x547   :  { %v791_v32 = vmul.f32 %v2095_v25, %v2558_v21 }
 0x548   :  { %v2097_v33 = vpop.eup %2096  ;;  %v805_v39 = vpack.c.bf16 %v793_v29, %v792_v38 }
 0x549   :  { %v2099_v40 = vpop.eup %2098  ;;  %v1958_v41 = vpop.permute.xlu0 %1957  ;;  %v804_v42 = vpack.c.bf16 %v791_v32, %v790_v23  ;;  %v794_v12 = vmul.f32 %v2097_v33, %v2562_v26 }
 0x54a   :  { %v2101_v45 = vpop.eup %2100  ;;  %v1960_v46 = vunpack.i.h.bf16 %v1958_v41  ;;  %v1959_v49 = vunpack.i.l.bf16 %v1958_v41  ;;  %v797_v11 = vmul.f32 %v2099_v40, %v2549_v8 }
 0x54b   :  { %v2103_v53 = vpop.eup %2102  ;;  %1853 = vmatprep.mubr.msk.bf16.mxu1 %vm625_vm2, %v804_v42  ;;  %v795_v50 = vmul.f32 %v2101_v45, %v2566_v30 }
 0x54c   :  { %v815_v21 = vpack.c.bf16 %v1960_v46, %v1959_v49  ;;  %1854 = vmatmul.mubr.msk.bf16.vlgmr.msra.gmra.mrb[20].mxu1 %vm625_vm2, %v805_v39  ;;  %v796_v44 = vmul.f32 %v2103_v53, %v2545_v4 }
 0x54d   :  { %1866 = vmatpush3.bf16.msra.mxu1 %v816_v17  ;;  %v806_v43 = vpack.c.bf16 %v795_v50, %v794_v12  ;;  %v2008_v17 = vld [vmem:[#allocation2] sm:$0xff]  }
 0x54e   :  { %1859 = vmatprep.subr.bf16.mxu0 %v815_v21  ;;  %v807_v14 = vpack.c.bf16 %v797_v11, %v796_v44 }
 0x54f   :  { %1860 = vmatpush3.bf16.msra.mxu0 %v815_v21  ;;  %1861 = vmatprep.mubr.msk.bf16.mxu0 %vm625_vm2, %v806_v43 }
 0x550   :  { %1873 = vmatprep.subr.bf16.mxu0 %v2008_v17 }
 0x552   :  { %1862 = vmatmul.mubr.msk.bf16.vlgmr.msra.gmra.mrb[8].mxu0 %vm625_vm2, %v807_v14 }
 0x553   :  { %1874 = vmatpush3.bf16.msra.mxu0 %v2008_v17 }
 0x578   :  { %v769_v54 = vpop.xlane.xlu1 %768 }
 0x579   :  { %2104 = vrcp.f32 %v769_v54 }
 0x57a   :  { %2106 = vrcp.f32 %v760_v24 }
 0x57b   :  { %2108 = vrcp.f32 %v766_v19 }
 0x57c   :  { %v763_v26 = vpop.xlane.xlu1 %762 }
 0x57d   :  { %2110 = vrcp.f32 %v763_v26 }
 0x580   :  { %v1963_v8 = vpop.permute.xlu1 %1962 }
 0x581   :  { %v1965_v30 = vunpack.i.h.bf16 %v1963_v8  ;;  %v1964_v56 = vunpack.i.l.bf16 %v1963_v8 }
 0x583   :  { %v817_v48 = vpack.c.bf16 %v1965_v30, %v1964_v56  ;;  %v2105_v57 = vpop.eup %2104 }
 0x584   :  { %v2107_v58 = vpop.eup %2106  ;;  %v801_v62 = vmul.f32 %v2105_v57, %v2582_v34 }
 0x585   :  { %1867 = vmatprep.subr.bf16.mxu1 %v817_v48  ;;  %v2109_v4 = vpop.eup %2108  ;;  %v798_v47 = vmul.f32 %v2107_v58, %v2574_v37  ;;  %v2009_v37 = vld [vmem:[#allocation2 + $0x8] sm:$0xff]  }
 0x586   :  { %1868 = vmatpush3.bf16.msra.mxu1 %v817_v48  ;;  %v800_v35 = vmul.f32 %v2109_v4, %v2570_v28  ;;  %1875 = vmatprep.subr.bf16.mxu0 %v2009_v37 }
 0x587   :  { %v2111_v60 = vpop.eup %2110  ;;  %1876 = vmatpush3.bf16.msra.mxu0 %v2009_v37 }
 0x588   :  { %v799_v63 = vmul.f32 %v2111_v60, %v2586_v52  ;;  %v809_v2 = vpack.c.bf16 %v801_v62, %v800_v35  ;;  %1877 = vmatprep.subr.bf16.mxu0 %v2010_v61 }
 0x58a   :  { %v808_v1 = vpack.c.bf16 %v799_v63, %v798_v47 }
 0x58b   :  { %1878 = vmatpush3.bf16.msra.mxu0 %v2010_v61 }
 0x58c   :  { %1869 = vmatprep.mubr.msk.bf16.mxu1 %vm625_vm2, %v808_v1  ;;  %1879 = vmatprep.subr.bf16.mxu0 %v2011_v20  ;;  %v1707_v1 = vld [vmem:[%s2832_s7] ss:$0 sm:$0xff] }
 0x58d   :  { %1870 = vmatmul.mubr.msk.bf16.vlgmr.msra.gmra.mrb[24].mxu1 %vm625_vm2, %v809_v2 }
 0x58e   :  { %1373 = vmatprep.mubr.bf16.mxu1 %v2191_v36 }
 0x58f   :  { %1880 = vmatpush3.bf16.msra.mxu0 %v2011_v20 }
 0x5fb   :  { %v1847_v51 = vpop.f32.mrb[16].mxu1 }
 0x5fc   :  { %v858_v5 = vpop.f32.mrb[17].mxu1 }
 0x5fd   :  { %v1848_v55 = vpop.f32.mrb[18].mxu1 }
 0x5fe   :  { %v861_v59 = vpop.f32.mrb[19].mxu1 }
 0x61f   :  { %v1855_v10 = vpop.f32.mrb[20].mxu1 }
 0x620   :  { %v913_v34 = vpop.f32.mrb[21].mxu1 }
 0x621   :  { %v1856_v27 = vpop.f32.mrb[22].mxu1 }
 0x622   :  { %v1966_v52 = vpack.i.bf16 %v1856_v27, %v1855_v10  ;;  %v916_v31 = vpop.f32.mrb[23].mxu1  ;;  %v2137_v27 = vld [vmem:[%s2825_s0 + $0x10] sm:$0xff] }
 0x623   :  { %v1976_v28 = vpack.i.bf16 %v916_v31, %v913_v34  ;;  %v2136_v34 = vld [vmem:[%s2825_s0] sm:$0xff] }
 0x624   :  { %1967 = vrot.lane.b32.xlu1 %v1966_v52, %s2195_s1 }
 0x625   :  { %v1863_v3 = vpop.f32.mrb[8].mxu0  ;;  %1977 = vrot.lane.b32.xlu0 %v1976_v28, %s2195_s1  ;;  %v2138_v28 = vld [vmem:[%s2825_s0 + $0x8] sm:$0xff] }
 0x626   :  { %v968_v13 = vpop.f32.mrb[9].mxu0 }
 0x627   :  { %v1864_v15 = vpop.f32.mrb[10].mxu0 }
 0x628   :  { %v1971_v16 = vpack.i.bf16 %v1864_v15, %v1863_v3  ;;  %v971_v18 = vpop.f32.mrb[11].mxu0  ;;  %v2139_v15 = vld [vmem:[%s2825_s0 + $0x18] sm:$0xff] }
 0x629   :  { %v1981_v19 = vpack.i.bf16 %v971_v18, %v968_v13 }
 0x62a   :  { %1972 = vrot.lane.b32.xlu1 %v1971_v16, %s2196_s16 }
 0x62b   :  { %1982 = vrot.lane.b32.xlu0 %v1981_v19, %s2196_s16 }
 0x660   :  { %v1871_v22 = vpop.f32.mrb[24].mxu1 }
 0x661   :  { %v1023_v0 = vpop.f32.mrb[25].mxu1 }
 0x662   :  { %v1872_v24 = vpop.f32.mrb[26].mxu1 }
 0x663   :  { %v1991_v25 = vpack.i.bf16 %v1872_v24, %v1871_v22  ;;  %v1026_v29 = vpop.f32.mrb[27].mxu1 }
 0x664   :  { %v1986_v23 = vpack.i.bf16 %v1026_v29, %v1023_v0 }
 0x665   :  { %1992 = vrot.lane.b32.xlu1 %v1991_v25, %s2197_s17 }
 0x666   :  { %1987 = vrot.lane.b32.xlu0 %v1986_v23, %s2197_s17 }
 0x696   :  { %v1968_v32 = vpop.permute.xlu1 %1967 }
 0x697   :  { %v1978_v33 = vpop.permute.xlu0 %1977  ;;  %v1970_v40 = vunpack.i.h.bf16 %v1968_v32  ;;  %v1969_v41 = vunpack.i.l.bf16 %v1968_v32 }
 0x698   :  { %v1980_v45 = vunpack.i.h.bf16 %v1978_v33  ;;  %v1979_v46 = vunpack.i.l.bf16 %v1978_v33 }
 0x699   :  { %v1089_v50 = vsel %vm362_vm1, %v1848_v55, %v1970_v40  ;;  %v1088_v11 = vsel %vm362_vm1, %v1847_v51, %v1969_v41 }
 0x69a   :  { %v1087_v43 = vsel %vm362_vm1, %v861_v59, %v1980_v45  ;;  %v1086_v44 = vsel %vm362_vm1, %v858_v5, %v1979_v46 }
 0x69c   :  { %v1973_v38 = vpop.permute.xlu1 %1972 }
 0x69d   :  { %v1983_v42 = vpop.permute.xlu0 %1982  ;;  %v1975_v49 = vunpack.i.h.bf16 %v1973_v38  ;;  %v1974_v39 = vunpack.i.l.bf16 %v1973_v38 }
 0x69e   :  { %v1985_v53 = vunpack.i.h.bf16 %v1983_v42  ;;  %v1984_v12 = vunpack.i.l.bf16 %v1983_v42 }
 0x69f   :  { %v1092_v8 = vsel %vm625_vm2, %v1088_v11, %v1974_v39  ;;  %v1093_v30 = vsel %vm625_vm2, %v1089_v50, %v1975_v49  ;;  %v2014_v11 = vld [vmem:[%s2835_s10 + $0x4] ss:$8 sps:$4 sm:$0xff]  }
 0x6a0   :  { %v1090_v57 = vsel %vm625_vm2, %v1086_v44, %v1984_v12  ;;  %v1091_v58 = vsel %vm625_vm2, %v1087_v43, %v1985_v53  ;;  %1341 = vmatprep.subr.bf16.mxu1 %v2014_v11  ;;  %v2017_v43 = vld [vmem:[%s2835_s10 + $0x14] ss:$8 sps:$4 sm:$0xff]   ;;  %v2015_v44 = vld [vmem:[%s2835_s10 + $0x10] ss:$8 sps:$4 sm:$0xff]  }
 0x6d7   :  { %v1993_v21 = vpop.permute.xlu1 %1992 }
 0x6d8   :  { %v1995_v14 = vunpack.i.h.bf16 %v1993_v21  ;;  %v1994_v54 = vunpack.i.l.bf16 %v1993_v21  ;;  %v1988_v26 = vpop.permute.xlu0 %1987  ;;  %v2012_v21 = vld [vmem:[%s2835_s10] ss:$8 sps:$4 sm:$0xff]  }
 0x6d9   :  { %v1990_v56 = vunpack.i.h.bf16 %v1988_v26  ;;  %v1989_v48 = vunpack.i.l.bf16 %v1988_v26  ;;  %1342 = vmatpush1.bf16.msra.mxu1 %v2012_v21  ;;  %v2023_v26 = vld [vmem:[%s2835_s10 + $0x34] ss:$8 sps:$4 sm:$0xff]  }
 0x6da   :  { %v1098_v4 = vsel %vm1094_vm3, %v1093_v30, %v1995_v14  ;;  %v1097_v60 = vsel %vm1094_vm3, %v1092_v8, %v1994_v54  ;;  %1343 = vmatprep.subr.bf16.mxu1 %v2017_v43  ;;  %v2020_v14 = vld [vmem:[%s2835_s10 + $0x24] ss:$8 sps:$4 sm:$0xff]   ;;  %v2018_v54 = vld [vmem:[%s2835_s10 + $0x20] ss:$8 sps:$4 sm:$0xff]   ;;  %v2021_v8 = vld [vmem:[%s2835_s10 + $0x30] ss:$8 sps:$4 sm:$0xff]  }
 0x6db   :  { %v1100_v62 = vpack.c.bf16 %v1098_v4, %v1097_v60  ;;  %v1096_v47 = vsel %vm1094_vm3, %v1091_v58, %v1990_v56  ;;  %v1095_v63 = vsel %vm1094_vm3, %v1090_v57, %v1989_v48 }
 0x6dc   :  { %v1099_v35 = vpack.c.bf16 %v1096_v47, %v1095_v63 }
 0x6dd   :  { %1344 = vmatpush1.bf16.msra.mxu1 %v2015_v44 }
 0x6de   :  { %1881 = vmatprep.mubr.msk.bf16.mxu0 %vm69_vm0, %v1099_v35  ;;  %1345 = vmatprep.subr.bf16.mxu1 %v2020_v14 }
 0x6df   :  { %1882 = vmatmul.mubr.msk.bf16.vlgmr.msra.gmra.mrb[12].mxu0 %vm69_vm0, %v1100_v62 }
 0x6e1   :  { %1346 = vmatpush1.bf16.msra.mxu1 %v2018_v54 }
 0x6e2   :  { %1347 = vmatprep.subr.bf16.mxu1 %v2023_v26 }
 0x6e5   :  { %1348 = vmatpush1.bf16.msra.mxu1 %v2021_v8 }
 0x7b2   :  { %v1883_v2 = vpop.f32.mrb[12].mxu0 }
 0x7b3   :  { %v1180_v51 = vpop.f32.mrb[13].mxu0  ;;  %v1189_v5 = vadd.f32 %v1883_v2, %v1707_v1 }
 0x7b4   :  { %v1181_v55 = vadd.f32 %v1707_v1, %v1180_v51  ;;  %v1884_v59 = vpop.f32.mrb[14].mxu0  ;;  %v1714_v51 = vld [vmem:[%s2833_s8] ss:$0 sm:$0xff] }
 0x7b5   :  { %v1183_v10 = vpop.f32.mrb[15].mxu0  ;;  %v2644_v52 = vadd.f32 %v2137_v27, %v1189_v5  ;;  %v1192_v31 = vadd.f32 %v1884_v59, %v1707_v1 }
 0x7b6   :  { %v2639_v17 = vadd.f32 %v2136_v34, %v1181_v55  ;;  %v1184_v37 = vadd.f32 %v1707_v1, %v1183_v10 }
 0x7b7   :  { %v2658_v16 = vadd.f32 %v2139_v15, %v1192_v31  ;;  %v1207_v18 = vsel %vm69_vm0, %v2644_v52, 0.0 }
 0x7b8   :  { %v2649_v61 = vadd.f32 %v2138_v28, %v1184_v37  ;;  %v1201_v3 = vsel %vm69_vm0, %v2639_v17, 0.0  ;;  %v1715_v37 = vld [vmem:[%s2834_s9] ss:$0 sm:$0xff] }
 0x7b9   :  { %1202 = vadd.xlane.f32.xlu0 %v1201_v3  ;;  %v1210_v19 = vsel %vm69_vm0, %v2658_v16, 0.0 }
 0x7ba   :  { %v1204_v13 = vsel %vm69_vm0, %v2649_v61, 0.0 }
 0x7bb   :  { %1205 = vadd.xlane.f32.xlu1 %v1204_v13 }
 0x7bd   :  { %1208 = vadd.xlane.f32.xlu0 %v1207_v18 }
 0x7c1   :  { %1211 = vadd.xlane.f32.xlu0 %v1210_v19 }
 0x846   :  { %v1203_v20 = vpop.xlane.xlu0 %1202 }
 0x847   :  { %v1213_v22 = vmul.f32 0.015625, %v1203_v20 }
 0x848   :  { %v1206_v0 = vpop.xlane.xlu1 %1205 }
 0x849   :  { %v1217_v24 = vsub.f32 %v2639_v17, %v1213_v22  ;;  %v1214_v25 = vmul.f32 0.015625, %v1206_v0 }
 0x84a   :  { %v1209_v29 = vpop.xlane.xlu0 %1208 }
 0x84b   :  { %v1218_v23 = vsub.f32 %v2649_v61, %v1214_v25  ;;  %v1215_v32 = vmul.f32 0.015625, %v1209_v29  ;;  %v1221_v33 = vmul.f32 %v1217_v24, %v1217_v24  ;;  %v2024_v25 = vld [vmem:[%s2837_s12 + $0x40] sm:$0xff]  }
 0x84c   :  { %v2025_v29 = vld [vmem:[%s2837_s12] sm:$0xff]   ;;  %1781 = vmatprep.subr.bf16.mxu0 %v2024_v25 }
 0x84d   :  { %v1219_v38 = vsub.f32 %v2644_v52, %v1215_v32  ;;  %v1225_v40 = vsel %vm69_vm0, %v1221_v33, 0.0  ;;  %v1222_v41 = vmul.f32 %v1218_v23, %v1218_v23  ;;  %1782 = vmatpush3.bf16.msra.mxu0 %v2025_v29  ;;  %v2028_v32 = vld [vmem:[%s2837_s12 + $0x50] sm:$0xff]  }
 0x84e   :  { %1226 = vadd.xlane.f32.xlu0 %v1225_v40  ;;  %v1212_v42 = vpop.xlane.xlu0 %1211  ;;  %v2029_v33 = vld [vmem:[%s2837_s12 + $0x10] sm:$0xff]   ;;  %v2031_v40 = vld [vmem:[%s2837_s12 + $0x18] sm:$0xff]  }
 0x84f   :  { %v1216_v45 = vmul.f32 0.015625, %v1212_v42  ;;  %v1228_v46 = vsel %vm69_vm0, %v1222_v41, 0.0  ;;  %v1223_v49 = vmul.f32 %v1219_v38, %v1219_v38  ;;  %v2032_v41 = vld [vmem:[%s2837_s12 + $0x60] sm:$0xff]  }
 0x850   :  { %1229 = vadd.xlane.f32.xlu1 %v1228_v46  ;;  %v2033_v42 = vld [vmem:[%s2837_s12 + $0x20] sm:$0xff]   ;;  %v2035_v46 = vld [vmem:[%s2837_s12 + $0x28] sm:$0xff]  }
 0x851   :  { %v1220_v39 = vsub.f32 %v2658_v16, %v1216_v45  ;;  %v1231_v53 = vsel %vm69_vm0, %v1223_v49, 0.0  ;;  %v2034_v45 = vld [vmem:[%s2837_s12 + $0x68] sm:$0xff]   ;;  %v2036_v49 = vld [vmem:[%s2837_s12 + $0x70] sm:$0xff]  }
 0x852   :  { %1232 = vadd.xlane.f32.xlu0 %v1231_v53  ;;  %v2038_v53 = vld [vmem:[%s2837_s12 + $0x78] sm:$0xff]  }
 0x853   :  { %v1224_v12 = vmul.f32 %v1220_v39, %v1220_v39 }
 0x855   :  { %v1234_v50 = vsel %vm69_vm0, %v1224_v12, 0.0  ;;  %v2039_v12 = vld [vmem:[%s2837_s12 + $0x38] sm:$0xff]  }
 0x856   :  { %1235 = vadd.xlane.f32.xlu1 %v1234_v50  ;;  %v1283_v50 = vld [vmem:[%s2836_s11] sm:$0x3] }
 0x857   :  { %v1288_v11 = vrot.slane %v1283_v50, %v157_v7  ;;  %v1292_v21 = vrot.slane %v1283_v50, %v161_v9 }
 0x8db   :  { %v1227_v30 = vpop.xlane.xlu0 %1226 }
 0x8dc   :  { %v1237_v56 = vmul.f32 0.015625, %v1227_v30 }
 0x8dd   :  { %v1230_v48 = vpop.xlane.xlu1 %1229 }
 0x8de   :  { %v1241_v57 = vadd.f32 1e-05, %v1237_v56  ;;  %v1238_v58 = vmul.f32 0.015625, %v1230_v48 }
 0x8df   :  { %v1233_v4 = vpop.xlane.xlu0 %1232 }
 0x8e0   :  { %2112 = vrsqrt.f32 %v1241_v57  ;;  %v1242_v60 = vadd.f32 1e-05, %v1238_v58  ;;  %v1239_v62 = vmul.f32 0.015625, %v1233_v4 }
 0x8e2   :  { %2114 = vrsqrt.f32 %v1242_v60  ;;  %v1243_v47 = vadd.f32 1e-05, %v1239_v62 }
 0x8e3   :  { %v1236_v63 = vpop.xlane.xlu1 %1235 }
 0x8e4   :  { %2116 = vrsqrt.f32 %v1243_v47  ;;  %v1240_v35 = vmul.f32 0.015625, %v1236_v63 }
 0x8e6   :  { %v1244_v1 = vadd.f32 1e-05, %v1240_v35 }
 0x8e8   :  { %2118 = vrsqrt.f32 %v1244_v1 }
 0x8ea   :  { %v2113_v2 = vpop.eup %2112 }
 0x8eb   :  { %v1249_v5 = vmul.f32 %v2113_v2, %v1217_v24 }
 0x8ec   :  { %v2115_v55 = vpop.eup %2114 }
 0x8ed   :  { %v1259_v59 = vmul.f32 %v1714_v51, %v1249_v5  ;;  %v1250_v10 = vmul.f32 %v2115_v55, %v1218_v23  ;;  %v2026_v23 = vld [vmem:[%s2837_s12 + $0x48] sm:$0xff]  }
 0x8ee   :  { %v2117_v34 = vpop.eup %2116  ;;  %1783 = vmatprep.subr.bf16.mxu0 %v2026_v23 }
 0x8ef   :  { %v1260_v27 = vmul.f32 %v1714_v51, %v1250_v10  ;;  %v1251_v31 = vmul.f32 %v2117_v34, %v1219_v38  ;;  %v1269_v28 = vadd.f32 %v1715_v37, %v1259_v59  ;;  %v2030_v38 = vld [vmem:[%s2837_s12 + $0x58] sm:$0xff]  }
 0x8f1   :  { %v1270_v3 = vadd.f32 %v1715_v37, %v1260_v27  ;;  %v1261_v19 = vmul.f32 %v1714_v51, %v1251_v31 }
 0x8f2   :  { %v2119_v13 = vpop.eup %2118 }
 0x8f3   :  { %v1252_v15 = vmul.f32 %v2119_v13, %v1220_v39  ;;  %v1273_v18 = vpack.c.bf16 %v1270_v3, %v1269_v28  ;;  %v1271_v0 = vadd.f32 %v1715_v37, %v1261_v19  ;;  %v2037_v39 = vld [vmem:[%s2837_s12 + $0x30] sm:$0xff]  }
 0x8f5   :  { %1724 = vmatmul.mubr.msk.bf16.vlgmr.msra.gmra.mrb[28].mxu1 %vm69_vm0, %v1273_v18  ;;  %v1262_v20 = vmul.f32 %v1714_v51, %v1252_v15 }
 0x8f6   :  { %1383 = vmatprep.mubr.bf16.mxu1 %v2191_v36  ;;  %v2027_v36 = vld [vmem:[%s2837_s12 + $0x8] sm:$0xff]  }
 0x8f7   :  { %v1272_v22 = vadd.f32 %v1715_v37, %v1262_v20  ;;  %1784 = vmatpush3.bf16.msra.mxu0 %v2027_v36 }
 0x8f8   :  { %1785 = vmatprep.subr.bf16.mxu0 %v2028_v32 }
 0x8f9   :  { %v1274_v24 = vpack.c.bf16 %v1272_v22, %v1271_v0 }
 0x8fb   :  { %1786 = vmatpush3.bf16.msra.mxu0 %v2029_v33 }
 0x8fc   :  { %1787 = vmatprep.subr.bf16.mxu0 %v2030_v38 }
 0x8fd   :  { %1725 = vmatmul.mubr.msk.bf16.gmra.mrb[32].mxu1 %vm69_vm0, %v1274_v24 }
 0x8ff   :  { %1788 = vmatpush3.bf16.msra.mxu0 %v2031_v40 }
 0x900   :  { %1789 = vmatprep.subr.bf16.mxu0 %v2032_v41 }
 0x903   :  { %1790 = vmatpush3.bf16.msra.mxu0 %v2033_v42 }
 0x904   :  { %1791 = vmatprep.subr.bf16.mxu0 %v2034_v45 }
 0x907   :  { %1792 = vmatpush3.bf16.msra.mxu0 %v2035_v46 }
 0x908   :  { %1793 = vmatprep.subr.bf16.mxu0 %v2036_v49 }
 0x90b   :  { %1794 = vmatpush3.bf16.msra.mxu0 %v2037_v39 }
 0x90c   :  { %1795 = vmatprep.subr.bf16.mxu0 %v2038_v53 }
 0x90f   :  { %1796 = vmatpush3.bf16.msra.mxu0 %v2039_v12 }
 0x9c8   :  { %v1375_v43 = vpop.f32.mrb[28].mxu1 }
 0x9c9   :  { %v2760_v44 = vadd.f32 %v1375_v43, %v1288_v11  ;;  %v1377_v14 = vpop.f32.mrb[29].mxu1 }
 0x9ca   :  { %v2762_v54 = vadd.f32 %v1377_v14, %v1292_v21  ;;  %v1379_v26 = vpop.f32.mrb[30].mxu1 }
 0x9cb   :  { %v1402_v8 = vmul.f32 0.044715, %v2760_v44  ;;  %v2765_v30 = vadd.f32 %v1379_v26, %v1288_v11  ;;  %v1381_v56 = vpop.f32.mrb[31].mxu1  ;;  %v1394_v26 = vmul.f32 0.5, %v2760_v44 }
 0x9cc   :  { %v1403_v48 = vmul.f32 0.044715, %v2762_v54  ;;  %v2768_v57 = vadd.f32 %v1381_v56, %v1292_v21 }
 0x9cd   :  { %v1410_v7 = vmul.f32 %v1402_v8, %v2760_v44  ;;  %v1404_v6 = vmul.f32 0.044715, %v2765_v30  ;;  %v1396_v8 = vmul.f32 0.5, %v2765_v30 }
 0x9ce   :  { %v1411_v9 = vmul.f32 %v1403_v48, %v2762_v54  ;;  %v1405_v58 = vmul.f32 0.044715, %v2768_v57  ;;  %v1395_v48 = vmul.f32 0.5, %v2762_v54 }
 0x9cf   :  { %v1418_v4 = vmul.f32 %v1410_v7, %v2760_v44  ;;  %v1412_v60 = vmul.f32 %v1404_v6, %v2765_v30  ;;  %v1397_v7 = vmul.f32 0.5, %v2768_v57 }
 0x9d0   :  { %v1419_v62 = vmul.f32 %v1411_v9, %v2762_v54  ;;  %v1413_v47 = vmul.f32 %v1405_v58, %v2768_v57  ;;  %v1385_v63 = vpop.f32.mrb[32].mxu1 }
 0x9d1   :  { %v1426_v35 = vadd.f32 %v1418_v4, %v2760_v44  ;;  %v1420_v1 = vmul.f32 %v1412_v60, %v2765_v30  ;;  %v2780_v2 = vadd.f32 %v1385_v63, %v1288_v11  ;;  %v1387_v51 = vpop.f32.mrb[33].mxu1 }
 0x9d2   :  { %v1421_v5 = vmul.f32 %v1413_v47, %v2768_v57  ;;  %v2783_v55 = vadd.f32 %v1387_v51, %v1292_v21  ;;  %v1389_v59 = vpop.f32.mrb[34].mxu1  ;;  %v1427_v10 = vadd.f32 %v1419_v62, %v2762_v54 }
 0x9d3   :  { %v1434_v34 = vmul.f32 0.7978845, %v1426_v35  ;;  %v1428_v37 = vadd.f32 %v1420_v1, %v2765_v30  ;;  %v1406_v27 = vmul.f32 0.044715, %v2780_v2  ;;  %v1390_v31 = vadd.f32 %v1389_v59, %v1288_v11  ;;  %v1391_v28 = vpop.f32.mrb[35].mxu1 }
 0x9d4   :  { %v1407_v3 = vmul.f32 0.044715, %v2783_v55  ;;  %v1392_v13 = vadd.f32 %v1391_v28, %v1292_v21  ;;  %v1429_v15 = vadd.f32 %v1421_v5, %v2768_v57  ;;  %v1435_v18 = vmul.f32 0.7978845, %v1427_v10 }
 0x9d5   :  { %2120 = vtanh.f32 %v1434_v34  ;;  %v1436_v19 = vmul.f32 0.7978845, %v1428_v37  ;;  %v1414_v20 = vmul.f32 %v1406_v27, %v2780_v2  ;;  %v1408_v22 = vmul.f32 0.044715, %v1390_v31 }
 0x9d6   :  { %v1415_v0 = vmul.f32 %v1407_v3, %v2783_v55  ;;  %v1409_v24 = vmul.f32 0.044715, %v1392_v13  ;;  %v1437_v25 = vmul.f32 0.7978845, %v1429_v15  ;;  %2122 = vtanh.f32 %v1435_v18 }
 0x9d7   :  { %2124 = vtanh.f32 %v1436_v19  ;;  %v1422_v29 = vmul.f32 %v1414_v20, %v2780_v2  ;;  %v1416_v23 = vmul.f32 %v1408_v22, %v1390_v31  ;;  %v1398_v30 = vmul.f32 0.5, %v2780_v2  ;;  %v1726_v20 = vld [vmem:[%s2838_s13] ss:$0 sm:$0xff]  ;;  %s2198_s13 = smov [#allocation5]  }
 0x9d8   :  { %v1423_v36 = vmul.f32 %v1415_v0, %v2783_v55  ;;  %v1417_v32 = vmul.f32 %v1409_v24, %v1392_v13  ;;  %2126 = vtanh.f32 %v1437_v25  ;;  %v1400_v54 = vmul.f32 0.5, %v1390_v31  ;;  %s1667_s0 = sshll.u32 %s2198_s13, 4  ;;  %s1668_s0 = int_to_ptr.vmem [resolvable:$true] %s1667_s0 }
 0x9d9   :  { %v1424_v33 = vmul.f32 %v1416_v23, %v1390_v31  ;;  %v1430_v38 = vadd.f32 %v1422_v29, %v2780_v2  ;;  %v1399_v57 = vmul.f32 0.5, %v2783_v55  ;;  %v1401_v10 = vmul.f32 0.5, %v1392_v13  ;;  %s2162_s21 = scalar_lea.vmem %s1668_s0, 512  ;;  %p2167_p9 = scmp.lt.s32.totalorder %s1668_s0, %s1668_s0 }
 0x9da   :  { %v1425_v40 = vmul.f32 %v1417_v32, %v1392_v13  ;;  %v1431_v41 = vadd.f32 %v1423_v36, %v2783_v55  ;;  %p2163_p8 = scmp.ne.s32.totalorder %s1668_s0, %s2162_s21  ;;  %p2168_p10 = scmp.lt.s32.totalorder %s2162_s21, %s2162_s21 }
 0x9db   :  { %v1432_v42 = vadd.f32 %v1424_v33, %v1390_v31  ;;  %v1438_v45 = vmul.f32 0.7978845, %v1430_v38 }
 0x9dc   :  { %v1433_v46 = vadd.f32 %v1425_v40, %v1392_v13  ;;  %v1439_v49 = vmul.f32 0.7978845, %v1431_v41  ;;  %p2169_p11 = por %p2168_p10, %p2167_p9 }
 0x9dd   :  { %v1440_v39 = vmul.f32 0.7978845, %v1432_v42  ;;  %2128 = vtanh.f32 %v1438_v45 }
 0x9de   :  { %v1441_v53 = vmul.f32 0.7978845, %v1433_v46  ;;  %2130 = vtanh.f32 %v1439_v49  ;;  %p2170_p12 = pnand %p2169_p11, %p2163_p8 }
 0x9df   :  { %v2121_v12 = vpop.eup %2120  ;;  %2132 = vtanh.f32 %v1440_v39 }
 0x9e0   :  { %v2123_v50 = vpop.eup %2122  ;;  %v1450_v11 = vadd.f32 1.0, %v2121_v12  ;;  %2134 = vtanh.f32 %v1441_v53 }
 0x9e1   :  { %v2125_v21 = vpop.eup %2124  ;;  %v1451_v43 = vadd.f32 1.0, %v2123_v50 }
 0x9e2   :  { %v2127_v14 = vpop.eup %2126  ;;  %v1452_v56 = vadd.f32 1.0, %v2125_v21  ;;  %v1458_v9 = vmul.f32 %v1450_v11, %v1394_v26 }
 0x9e3   :  { %v1453_v6 = vadd.f32 1.0, %v2127_v14  ;;  %v1459_v4 = vmul.f32 %v1451_v43, %v1395_v48 }
 0x9e4   :  { %v1460_v58 = vmul.f32 %v1452_v56, %v1396_v8 }
 0x9e5   :  { %v1461_v60 = vmul.f32 %v1453_v6, %v1397_v7 }
 0x9e6   :  { %v1466_v62 = vpack.c.bf16 %v1460_v58, %v1458_v9 }
 0x9e7   :  { %v2129_v47 = vpop.eup %2128  ;;  %v1467_v63 = vpack.c.bf16 %v1461_v60, %v1459_v4 }
 0x9e8   :  { %v2131_v35 = vpop.eup %2130  ;;  %v1454_v1 = vadd.f32 1.0, %v2129_v47 }
 0x9e9   :  { %v2133_v51 = vpop.eup %2132  ;;  %1637 = vmatprep.mubr.bf16.mxu0 %v1467_v63  ;;  %v1455_v44 = vadd.f32 1.0, %v2131_v35 }
 0x9ea   :  { %v2135_v5 = vpop.eup %2134  ;;  %1638 = vmatmul.mubr.bf16.vlgmr.msra.gmra.mrb[16].mxu0 %v1466_v62  ;;  %v1456_v59 = vadd.f32 1.0, %v2133_v51  ;;  %v1462_v37 = vmul.f32 %v1454_v1, %v1398_v30 }
 0x9eb   :  { %v1457_v34 = vadd.f32 1.0, %v2135_v5  ;;  %v1463_v28 = vmul.f32 %v1455_v44, %v1399_v57 }
 0x9ec   :  { %v1464_v27 = vmul.f32 %v1456_v59, %v1400_v54 }
 0x9ed   :  { %v1465_v3 = vmul.f32 %v1457_v34, %v1401_v10 }
 0x9ee   :  { %v1468_v15 = vpack.c.bf16 %v1464_v27, %v1462_v37 }
 0x9ef   :  { %v1469_v18 = vpack.c.bf16 %v1465_v3, %v1463_v28 }
 0x9f1   :  { %1645 = vmatprep.mubr.bf16.mxu0 %v1469_v18 }
 0x9f2   :  { %1646 = vmatmul.mubr.bf16.gmra.mrb[20].mxu0 %v1468_v15 }
 0xabd   :  { %v1797_v19 = vpop.f32.mrb[16].mxu0 }
 0xabe   :  { %v1798_v2 = vpop.f32.mrb[17].mxu0 }
 0xabf   :  { %v1799_v31 = vadd.f32 %v1798_v2, %v1797_v19  ;;  %v1800_v22 = vpop.f32.mrb[18].mxu0 }
 0xac0   :  { %v1801_v0 = vpop.f32.mrb[19].mxu0 }
 0xac1   :  { %v1640_v55 = vadd.f32 %v1799_v31, %v1726_v20  ;;  %v1802_v13 = vadd.f32 %v1801_v0, %v1800_v22 }
 0xac3   :  { %v1654_v24 = vadd.f32 %v1640_v55, %v2639_v17  ;;  %v1643_v25 = vadd.f32 %v1802_v13, %v1726_v20 }
 0xac5   :  { %1658 = vst.msk [vmem:[#allocation5] sm:$0xff] %vm69_vm0, %v1654_v24  ;;  %v1655_v29 = vadd.f32 %v1643_v25, %v2649_v61  ;;  %v1803_v23 = vpop.f32.mrb[20].mxu0 }
 0xac6   :  { %v1804_v36 = vpop.f32.mrb[21].mxu0 }
 0xac7   :  { %1659 = vst.msk [vmem:[#allocation5 + $0x8] sm:$0xff] %vm69_vm0, %v1655_v29  ;;  %v1805_v32 = vadd.f32 %v1804_v36, %v1803_v23  ;;  %v1806_v33 = vpop.f32.mrb[22].mxu0 }
 0xac8   :  { %v1807_v38 = vpop.f32.mrb[23].mxu0 }
 0xac9   :  { %v1648_v40 = vadd.f32 %v1805_v32, %v1726_v20  ;;  %v1808_v41 = vadd.f32 %v1807_v38, %v1806_v33 }
 0xacb   :  { %v1656_v42 = vadd.f32 %v1648_v40, %v2644_v52  ;;  %v1651_v45 = vadd.f32 %v1808_v41, %v1726_v20 }
 0xacd   :  { %1660 = vst.msk [vmem:[#allocation5 + $0x10] sm:$0xff] %vm69_vm0, %v1656_v42  ;;  %v1657_v17 = vadd.f32 %v1651_v45, %v2658_v16 }
 0xacf   :  { %1661 = vst.msk [vmem:[#allocation5 + $0x18] sm:$0xff] %vm69_vm0, %v1657_v17 }
 0xad0   :  { %2173 = shalt.err (!%p2170_p12)
}
 0xad1   :  { %s2174_s24 = scalar_lea.hbm %s2839_s14, 512 }
 0xad2   :  { %p2175_p13 = scmp.ne.s32.totalorder %s2839_s14, %s2174_s24  ;;  %p2178_p0 = scmp.lt.u32.totalorder %s2174_s24, %s2839_s14 }
 0xad4   :  { %p2180_p1 = pnand %p2178_p0, %p2175_p13 }
 0xad6   :  { %2183 = shalt.err (!%p2180_p1)
}
 0xad7   :  { %s2199_s29 = smov 128   ;;  %s2200_s15 = smov 8  }
 0xad8   :  { %1673 = dma.vmem_to_hbm [thread:$0]  %s1668_s0, 512, %s2839_s14, [#allocation4], %s2199_s29, %s2199_s29, %s2200_s15  }
 0xad9   :  { %2186 = dma.done.wait [#allocation4], 512  }
 0xada   :  { %2187 = vsyncadd [#allocation4], 4294966784 }
 0xadb   :  { %1677 = vsyncpa [#allocation3], 1 }
 0xadc   :  { %1678 = vsyncpa [#allocation4], 1 }

</bundles_post_ra>
